<compile_context>
chip_gen: v7x
topology: tpu7x:2x2x1
jax: 0.10.0
libtpu: 0.0.40
codegen_flags: <defaults>
</compile_context>

<pallas_src>
import math
import jax
import jax.numpy as jnp
from jax.experimental import pallas as pl
from jax.experimental.pallas import tpu as pltpu

# ---- small BERT-like config (synthetic) -------------------------------------
B, S, H = 2, 8, 32          # batch, seq, hidden
NH = 4                      # attention heads
HD = H // NH                # head dim
I = 64                      # FFN intermediate
VOCAB = 100
MAXPOS = 64
NLAYERS = 2
EPS = 1e-12                 # BERT LayerNorm eps
SCALE = 1.0 / math.sqrt(HD)
M = B * S                   # batch folded into matmul M dimension
VP = max(H, I)              # packed 1-D-parameter row width

# rows of the packed per-layer vector table
_BQ, _BK, _BV, _BO, _G1, _BE1, _B1, _B2, _G2, _BE2 = range(10)
NVEC = 10


# ---- shared math helpers (used in-kernel and in the pure-JAX reference) ------
def _ln(x, g, b):
    mean = jnp.mean(x, axis=-1, keepdims=True)
    var = jnp.mean(jnp.square(x - mean), axis=-1, keepdims=True)
    return (x - mean) * jax.lax.rsqrt(var + EPS) * g + b


def _gelu(x):
    # TODO(synk): HF BERT uses erf-based GELU; tanh approximation (~1e-3 diff).
    return 0.5 * x * (1.0 + jnp.tanh(0.7978845608028654 * (x + 0.044715 * x * x * x)))


# ---- per-layer kernel body (grid axis = encoder layer) ------------------------
def bert_layer_kernel(emb_ref, bias_ref, gvec_ref, wattn_ref, w1_ref, w2_ref,
                      lvec_ref, wp_ref,
                      seq_ref, pool_ref,
                      x_ref):
    f32 = jnp.float32
    layer = pl.program_id(0)

    # Layer 0: embedding LayerNorm seeds the activation carry (VMEM scratch).
    @pl.when(layer == 0)
    def _():
        x_ref[...] = _ln(emb_ref[...], gvec_ref[0, :], gvec_ref[1, :])

    x = x_ref[...]                                   # (M, H) activations
    bias = bias_ref[...][:, None, :]                 # (B, 1, S) additive mask

    lv = lvec_ref[...]                               # (10, VP) packed 1-D params

    # ---- multi-head self-attention: whole-tensor projections -----------------
    q = jnp.dot(x, wattn_ref[0], preferred_element_type=f32) + lv[_BQ, :H]
    k = jnp.dot(x, wattn_ref[1], preferred_element_type=f32) + lv[_BK, :H]
    v = jnp.dot(x, wattn_ref[2], preferred_element_type=f32) + lv[_BV, :H]

    # Per-head score/context (single-batch-dim einsums); static lane slices of
    # the whole Q/K/V, context concatenated once -> single output projection.
    ctx_heads = []
    for h in range(NH):
        sl = slice(h * HD, (h + 1) * HD)
        q3 = q[:, sl].reshape(B, S, HD)
        k3 = k[:, sl].reshape(B, S, HD)
        v3 = v[:, sl].reshape(B, S, HD)
        s = jnp.einsum('bqd,bkd->bqk', q3, k3,
                       preferred_element_type=f32) * SCALE + bias
        mx = jnp.max(s, axis=-1, keepdims=True)
        e = jnp.exp(s - mx)
        p = e * pl.reciprocal(jnp.sum(e, axis=-1, keepdims=True), approx=True)
        ctx_heads.append(jnp.einsum('bqk,bkd->bqd', p, v3,
                                    preferred_element_type=f32).reshape(M, HD))
    ctx = jnp.concatenate(ctx_heads, axis=-1)        # (M, H)

    attn = jnp.dot(ctx, wattn_ref[3], preferred_element_type=f32) + lv[_BO, :H]
    y = _ln(x + attn, lv[_G1, :H], lv[_BE1, :H])

    # ---- feed-forward ---------------------------------------------------------
    h1 = _gelu(jnp.dot(y, w1_ref[...], preferred_element_type=f32) + lv[_B1, :I])
    h2 = jnp.dot(h1, w2_ref[...], preferred_element_type=f32) + lv[_B2, :H]
    x_new = _ln(y + h2, lv[_G2, :H], lv[_BE2, :H])
    x_ref[...] = x_new                               # carry to next layer

    # ---- last layer: write lane-dense sequence output + pooled CLS ------------
    @pl.when(layer == NLAYERS - 1)
    def _():
        seq_ref[...] = x_new                         # (M, H), reshaped host-side
        cls = x_new.reshape(B, S, H)[:, 0, :]        # (B, H)
        pool_ref[...] = jnp.tanh(
            jnp.dot(cls, wp_ref[...], preferred_element_type=f32) + gvec_ref[2, :])


# ---- host-side parameter packing (8 operands total) ---------------------------
def _pack_params(params):
    layers = params['layers']
    st = lambda name: jnp.stack([lp[name] for lp in layers], axis=0)

    # attention weights unsplit, stacked: (L, 4, H, H) with rows q, k, v, o
    wattn = jnp.stack([st('wq'), st('wk'), st('wv'), st('wo')], axis=1)
    w1 = st('w1')                                    # (L, H, I)
    w2 = st('w2')                                    # (L, I, H)

    def row(v):                                      # (L, n) -> (L, VP)
        return jnp.pad(v, ((0, 0), (0, VP - v.shape[1])))

    lvec = jnp.stack([row(st(n)) for n in
                      ('bq', 'bk', 'bv', 'bo', 'g1', 'be1',
                       'b1', 'b2', 'g2', 'be2')], axis=1)        # (L, 10, VP)
    gvec = jnp.stack([params['emb_g'], params['emb_b'],
                      params['pooler_b']], axis=0)               # (3, H)
    return wattn, w1, w2, lvec, gvec


# ---- deterministic parameter init (stands in for pretrained checkpoint) -------
# TODO(synk): loading the real bert-base-uncased checkpoint/config has no
# in-script equivalent; weights are deterministic random stand-ins.
def init_params(key):
    keys = iter(jax.random.split(key, 8 + NLAYERS * 8))

    def nrm(shape):
        return 0.02 * jax.random.normal(next(keys), shape, dtype=jnp.float32)

    params = {
        'word_emb': nrm((VOCAB, H)),
        'pos_emb': nrm((MAXPOS, H)),
        'type_emb': nrm((2, H)),
        'emb_g': jnp.ones((H,), jnp.float32),
        'emb_b': jnp.zeros((H,), jnp.float32),
        'pooler_w': nrm((H, H)),
        'pooler_b': jnp.zeros((H,), jnp.float32),
        'layers': [],
    }
    for _ in range(NLAYERS):
        params['layers'].append({
            'wq': nrm((H, H)), 'bq': jnp.zeros((H,), jnp.float32),
            'wk': nrm((H, H)), 'bk': jnp.zeros((H,), jnp.float32),
            'wv': nrm((H, H)), 'bv': jnp.zeros((H,), jnp.float32),
            'wo': nrm((H, H)), 'bo': jnp.zeros((H,), jnp.float32),
            'g1': jnp.ones((H,), jnp.float32), 'be1': jnp.zeros((H,), jnp.float32),
            'w1': nrm((H, I)), 'b1': jnp.zeros((I,), jnp.float32),
            'w2': nrm((I, H)), 'b2': jnp.zeros((H,), jnp.float32),
            'g2': jnp.ones((H,), jnp.float32), 'be2': jnp.zeros((H,), jnp.float32),
        })
    return params


# ---- full TextModel.forward equivalent -----------------------------------------
@jax.jit
def text_model_forward(params, input_ids, attention_mask):
    # Embedding gather is glue (XLA); everything downstream is one Pallas call.
    emb = (jnp.take(params['word_emb'], input_ids, axis=0)
           + params['pos_emb'][:S][None, :, :]
           + params['type_emb'][0][None, None, :]
           ).astype(jnp.float32).reshape(M, H)

    # BERT extended attention mask: (1 - mask) * -10000, added to scores.
    mask_bias = (1.0 - attention_mask.astype(jnp.float32)) * -10000.0   # (B, S)

    wattn, w1, w2, lvec, gvec = _pack_params(params)
    pooler_w = params['pooler_w']

    # Advisory cost estimate so XLA overlaps the gather/mask prep with the
    # kernel's weight-DMA prologue.
    flops = (NLAYERS * (8 * M * H * H + 4 * M * H * I + 4 * B * NH * S * S * HD)
             + 2 * B * H * H)
    transcendentals = NLAYERS * (B * NH * S * S + M * I) + B * H
    operand_elems = (emb.size + mask_bias.size + gvec.size + wattn.size
                     + w1.size + w2.size + lvec.size + pooler_w.size)
    bytes_accessed = 4 * int(operand_elems + M * H + B * H)

    seq2d, pooled = pl.pallas_call(
        bert_layer_kernel,
        out_shape=(jax.ShapeDtypeStruct((M, H), jnp.float32),
                   jax.ShapeDtypeStruct((B, H), jnp.float32)),
        grid_spec=pltpu.PrefetchScalarGridSpec(
            num_scalar_prefetch=0,
            grid=(NLAYERS,),
            in_specs=[
                pl.BlockSpec((M, H), lambda l: (0, 0)),           # embeddings
                pl.BlockSpec((B, S), lambda l: (0, 0)),           # mask bias
                pl.BlockSpec((3, H), lambda l: (0, 0)),           # global vecs
                pl.BlockSpec((None, 4, H, H), lambda l: (l, 0, 0, 0)),   # wq/k/v/o
                pl.BlockSpec((None, H, I), lambda l: (l, 0, 0)),  # ffn w1
                pl.BlockSpec((None, I, H), lambda l: (l, 0, 0)),  # ffn w2
                pl.BlockSpec((None, NVEC, VP), lambda l: (l, 0, 0)),  # packed 1-D
                pl.BlockSpec((H, H), lambda l: (0, 0)),           # pooler w
            ],
            out_specs=[
                pl.BlockSpec((M, H), lambda l: (0, 0)),           # sequence (lane-dense)
                pl.BlockSpec((B, H), lambda l: (0, 0)),           # pooled CLS
            ],
            scratch_shapes=[pltpu.VMEM((M, H), jnp.float32)],     # activation carry
        ),
        compiler_params=pltpu.CompilerParams(
            dimension_semantics=("arbitrary",)),
        cost_estimate=pl.CostEstimate(flops=flops,
                                      transcendentals=transcendentals,
                                      bytes_accessed=bytes_accessed),
    )(emb, mask_bias, gvec, wattn, w1, w2, lvec, pooler_w)

    # mirrors BertModel output: (sequence_output, pooled_output)
    return seq2d.reshape(B, S, H), pooled


# ---- pure-JAX reference (exact softmax divide) for a sanity check ---------------
def _forward_reference(params, input_ids, attention_mask):
    emb = (jnp.take(params['word_emb'], input_ids, axis=0)
           + params['pos_emb'][:S][None, :, :]
           + params['type_emb'][0][None, None, :]).astype(jnp.float32)
    x = _ln(emb, params['emb_g'], params['emb_b'])                       # (B,S,H)
    bias = ((1.0 - attention_mask.astype(jnp.float32)) * -10000.0)[:, None, None, :]
    for lp in params['layers']:
        q = x @ lp['wq'] + lp['bq']
        k = x @ lp['wk'] + lp['bk']
        v = x @ lp['wv'] + lp['bv']
        split = lambda t: t.reshape(B, S, NH, HD).transpose(0, 2, 1, 3)
        s = jnp.einsum('bnqd,bnkd->bnqk', split(q), split(k)) * SCALE + bias
        p = jax.nn.softmax(s, axis=-1)
        ctx = jnp.einsum('bnqk,bnkd->bnqd', p, split(v)
                         ).transpose(0, 2, 1, 3).reshape(B, S, H)
        y = _ln(x + ctx @ lp['wo'] + lp['bo'], lp['g1'], lp['be1'])
        h1 = _gelu(y @ lp['w1'] + lp['b1'])
        x = _ln(y + h1 @ lp['w2'] + lp['b2'], lp['g2'], lp['be2'])
    pooled = jnp.tanh(x[:, 0, :] @ params['pooler_w'] + params['pooler_b'])
    return x, pooled


if __name__ == "__main__":
    key = jax.random.PRNGKey(0)
    k_par, k_ids = jax.random.split(key)
    params = init_params(k_par)

    input_ids = jax.random.randint(k_ids, (B, S), 0, VOCAB, dtype=jnp.int32)
    attention_mask = jnp.ones((B, S), dtype=jnp.int32)
    attention_mask = attention_mask.at[1, 6:].set(0)   # pad last 2 tokens of row 1

    seq_out, pooled_out = text_model_forward(params, input_ids, attention_mask)
    jax.block_until_ready((seq_out, pooled_out))

    assert seq_out.shape == (B, S, H) and pooled_out.shape == (B, H)
    assert bool(jnp.all(jnp.isfinite(seq_out))) and bool(jnp.all(jnp.isfinite(pooled_out)))

    # numerics check vs. pure-JAX reference (approx reciprocal -> loose tol)
    ref_seq, ref_pool = _forward_reference(params, input_ids, attention_mask)
    assert bool(jnp.allclose(seq_out, ref_seq, atol=2e-2, rtol=2e-2))
    assert bool(jnp.allclose(pooled_out, ref_pool, atol=2e-2, rtol=2e-2))

    print("KERNEL_OK")
</pallas_src>

<mosaic_0001>
module attributes {stable_mosaic.version = 11 : i64} {
  func.func @bert_layer_kernel(%arg0: i32, %arg1: memref<16x32xf32, #tpu.memory_space<vmem>>, %arg2: memref<2x8xf32, #tpu.memory_space<vmem>>, %arg3: memref<3x32xf32, #tpu.memory_space<vmem>>, %arg4: memref<1x4x32x32xf32, #tpu.memory_space<vmem>>, %arg5: memref<1x32x64xf32, #tpu.memory_space<vmem>>, %arg6: memref<1x64x32xf32, #tpu.memory_space<vmem>>, %arg7: memref<1x10x64xf32, #tpu.memory_space<vmem>>, %arg8: memref<32x32xf32, #tpu.memory_space<vmem>>, %arg9: memref<16x32xf32, #tpu.memory_space<vmem>>, %arg10: memref<2x32xf32, #tpu.memory_space<vmem>>, %arg11: memref<16x32xf32, #tpu.memory_space<vmem>>) attributes {dimension_semantics = [#tpu.dimension_semantics<arbitrary>], iteration_bounds = array<i64: 2>, scalar_prefetch = 0 : i64, scratch_operands = 1 : i64, tpu.core_type = #tpu.core_type<tc>, window_params = [{pipeline_mode = #tpu.pipeline_mode<synchronous>, transform_indices = @transform_0, window_bounds = array<i64: 16, 32>}, {pipeline_mode = #tpu.pipeline_mode<synchronous>, transform_indices = @transform_1, window_bounds = array<i64: 2, 8>}, {pipeline_mode = #tpu.pipeline_mode<synchronous>, transform_indices = @transform_2, window_bounds = array<i64: 3, 32>}, {transform_indices = @transform_3, window_bounds = array<i64: 1, 4, 32, 32>}, {transform_indices = @transform_4, window_bounds = array<i64: 1, 32, 64>}, {transform_indices = @transform_5, window_bounds = array<i64: 1, 64, 32>}, {transform_indices = @transform_6, window_bounds = array<i64: 1, 10, 64>}, {pipeline_mode = #tpu.pipeline_mode<synchronous>, transform_indices = @transform_7, window_bounds = array<i64: 32, 32>}, {pipeline_mode = #tpu.pipeline_mode<synchronous>, transform_indices = @transform_8, window_bounds = array<i64: 16, 32>}, {pipeline_mode = #tpu.pipeline_mode<synchronous>, transform_indices = @transform_9, window_bounds = array<i64: 2, 32>}]} {
    %c0_i32 = arith.constant 0 : i32
    %0 = arith.cmpi eq, %arg0, %c0_i32 : i32
    %1 = arith.extui %0 : i1 to i32
    %c0_i32_0 = arith.constant 0 : i32
    %2 = arith.cmpi ne, %1, %c0_i32_0 : i32
    scf.if %2 {
      %c0_68 = arith.constant 0 : index
      %c0_69 = arith.constant 0 : index
      %224 = vector.load %arg1[%c0_68, %c0_69] : memref<16x32xf32, #tpu.memory_space<vmem>>, vector<16x32xf32>
      %c0_70 = arith.constant 0 : index
      %c0_71 = arith.constant 0 : index
      %225 = vector.load %arg3[%c0_70, %c0_71] : memref<3x32xf32, #tpu.memory_space<vmem>>, vector<1x32xf32>
      %226 = vector.shape_cast %225 : vector<1x32xf32> to vector<32xf32>
      %c1_72 = arith.constant 1 : index
      %c0_73 = arith.constant 0 : index
      %227 = vector.load %arg3[%c1_72, %c0_73] : memref<3x32xf32, #tpu.memory_space<vmem>>, vector<1x32xf32>
      %228 = vector.shape_cast %227 : vector<1x32xf32> to vector<32xf32>
      %cst_74 = arith.constant dense<0.000000e+00> : vector<16xf32>
      %229 = vector.multi_reduction <add>, %224, %cst_74 [1] : vector<16x32xf32> to vector<16xf32>
      %230 = vector.shape_cast %229 : vector<16xf32> to vector<16x1xf32>
      %cst_75 = arith.constant 3.200000e+01 : f32
      %231 = vector.broadcast %cst_75 : f32 to vector<16x1xf32>
      %232 = arith.divf %230, %231 : vector<16x1xf32>
      %233 = vector.broadcast %232 : vector<16x1xf32> to vector<16x32xf32>
      %234 = arith.subf %224, %233 : vector<16x32xf32>
      %235 = arith.mulf %234, %234 : vector<16x32xf32>
      %cst_76 = arith.constant dense<0.000000e+00> : vector<16xf32>
      %236 = vector.multi_reduction <add>, %235, %cst_76 [1] : vector<16x32xf32> to vector<16xf32>
      %237 = vector.shape_cast %236 : vector<16xf32> to vector<16x1xf32>
      %cst_77 = arith.constant 3.200000e+01 : f32
      %238 = vector.broadcast %cst_77 : f32 to vector<16x1xf32>
      %239 = arith.divf %237, %238 : vector<16x1xf32>
      %240 = vector.broadcast %232 : vector<16x1xf32> to vector<16x32xf32>
      %241 = arith.subf %224, %240 : vector<16x32xf32>
      %cst_78 = arith.constant 9.99999996E-13 : f32
      %242 = vector.broadcast %cst_78 : f32 to vector<16x1xf32>
      %243 = arith.addf %239, %242 : vector<16x1xf32>
      %244 = math.rsqrt %243 : vector<16x1xf32>
      %245 = vector.broadcast %244 : vector<16x1xf32> to vector<16x32xf32>
      %246 = arith.mulf %241, %245 : vector<16x32xf32>
      %247 = vector.shape_cast %226 : vector<32xf32> to vector<1x32xf32>
      %248 = vector.broadcast %247 : vector<1x32xf32> to vector<16x32xf32>
      %249 = arith.mulf %246, %248 : vector<16x32xf32>
      %250 = vector.shape_cast %228 : vector<32xf32> to vector<1x32xf32>
      %251 = vector.broadcast %250 : vector<1x32xf32> to vector<16x32xf32>
      %252 = arith.addf %249, %251 : vector<16x32xf32>
      %c0_79 = arith.constant 0 : index
      %c0_80 = arith.constant 0 : index
      %253 = vector.load %arg11[%c0_79, %c0_80] : memref<16x32xf32, #tpu.memory_space<vmem>>, vector<16x32xf32>
      tpu.vector_store %arg11[%c0_79, %c0_80], %252 {strides = array<i32>} : memref<16x32xf32, #tpu.memory_space<vmem>>, vector<16x32xf32>,
    } else {
    }
    %c0 = arith.constant 0 : index
    %c0_1 = arith.constant 0 : index
    %3 = vector.load %arg11[%c0, %c0_1] : memref<16x32xf32, #tpu.memory_space<vmem>>, vector<16x32xf32>
    %c0_2 = arith.constant 0 : index
    %c0_3 = arith.constant 0 : index
    %4 = vector.load %arg2[%c0_2, %c0_3] : memref<2x8xf32, #tpu.memory_space<vmem>>, vector<2x8xf32>
    %5 = vector.shape_cast %4 : vector<2x8xf32> to vector<2x1x8xf32>
    %c0_4 = arith.constant 0 : index
    %c0_5 = arith.constant 0 : index
    %c0_6 = arith.constant 0 : index
    %6 = vector.load %arg7[%c0_4, %c0_5, %c0_6] : memref<1x10x64xf32, #tpu.memory_space<vmem>>, vector<1x10x64xf32>
    %7 = vector.shape_cast %6 : vector<1x10x64xf32> to vector<10x64xf32>
    %c0_7 = arith.constant 0 : index
    %c0_8 = arith.constant 0 : index
    %c0_9 = arith.constant 0 : index
    %c0_10 = arith.constant 0 : index
    %8 = vector.load %arg4[%c0_7, %c0_8, %c0_9, %c0_10] : memref<1x4x32x32xf32, #tpu.memory_space<vmem>>, vector<1x1x32x32xf32>
    %9 = vector.shape_cast %8 : vector<1x1x32x32xf32> to vector<32x32xf32>
    %cst = arith.constant dense<0.000000e+00> : vector<16x32xf32>
    %10 = tpu.matmul %3, %9, %cst {dimension_numbers = #tpu.dot_dimension_numbers<[1], [0], [0], [1], [0, 0, 1, 1], [], []>} : vector<16x32xf32>, vector<32x32xf32>, vector<16x32xf32> -> vector<16x32xf32>
    %11 = vector.extract_strided_slice %7 {offsets = [0, 0], sizes = [1, 32], strides = [1, 1]} : vector<10x64xf32> to vector<1x32xf32>
    %12 = vector.shape_cast %11 : vector<1x32xf32> to vector<32xf32>
    %13 = vector.shape_cast %12 : vector<32xf32> to vector<1x32xf32>
    %14 = vector.broadcast %13 : vector<1x32xf32> to vector<16x32xf32>
    %15 = arith.addf %10, %14 : vector<16x32xf32>
    %c0_11 = arith.constant 0 : index
    %c1 = arith.constant 1 : index
    %c0_12 = arith.constant 0 : index
    %c0_13 = arith.constant 0 : index
    %16 = vector.load %arg4[%c0_11, %c1, %c0_12, %c0_13] : memref<1x4x32x32xf32, #tpu.memory_space<vmem>>, vector<1x1x32x32xf32>
    %17 = vector.shape_cast %16 : vector<1x1x32x32xf32> to vector<32x32xf32>
    %cst_14 = arith.constant dense<0.000000e+00> : vector<16x32xf32>
    %18 = tpu.matmul %3, %17, %cst_14 {dimension_numbers = #tpu.dot_dimension_numbers<[1], [0], [0], [1], [0, 0, 1, 1], [], []>} : vector<16x32xf32>, vector<32x32xf32>, vector<16x32xf32> -> vector<16x32xf32>
    %19 = vector.extract_strided_slice %7 {offsets = [1, 0], sizes = [1, 32], strides = [1, 1]} : vector<10x64xf32> to vector<1x32xf32>
    %20 = vector.shape_cast %19 : vector<1x32xf32> to vector<32xf32>
    %21 = vector.shape_cast %20 : vector<32xf32> to vector<1x32xf32>
    %22 = vector.broadcast %21 : vector<1x32xf32> to vector<16x32xf32>
    %23 = arith.addf %18, %22 : vector<16x32xf32>
    %c0_15 = arith.constant 0 : index
    %c2 = arith.constant 2 : index
    %c0_16 = arith.constant 0 : index
    %c0_17 = arith.constant 0 : index
    %24 = vector.load %arg4[%c0_15, %c2, %c0_16, %c0_17] : memref<1x4x32x32xf32, #tpu.memory_space<vmem>>, vector<1x1x32x32xf32>
    %25 = vector.shape_cast %24 : vector<1x1x32x32xf32> to vector<32x32xf32>
    %cst_18 = arith.constant dense<0.000000e+00> : vector<16x32xf32>
    %26 = tpu.matmul %3, %25, %cst_18 {dimension_numbers = #tpu.dot_dimension_numbers<[1], [0], [0], [1], [0, 0, 1, 1], [], []>} : vector<16x32xf32>, vector<32x32xf32>, vector<16x32xf32> -> vector<16x32xf32>
    %27 = vector.extract_strided_slice %7 {offsets = [2, 0], sizes = [1, 32], strides = [1, 1]} : vector<10x64xf32> to vector<1x32xf32>
    %28 = vector.shape_cast %27 : vector<1x32xf32> to vector<32xf32>
    %29 = vector.shape_cast %28 : vector<32xf32> to vector<1x32xf32>
    %30 = vector.broadcast %29 : vector<1x32xf32> to vector<16x32xf32>
    %31 = arith.addf %26, %30 : vector<16x32xf32>
    %32 = vector.extract_strided_slice %15 {offsets = [0, 0], sizes = [16, 8], strides = [1, 1]} : vector<16x32xf32> to vector<16x8xf32>
    %33 = vector.shape_cast %32 : vector<16x8xf32> to vector<2x8x8xf32>
    %34 = vector.extract_strided_slice %23 {offsets = [0, 0], sizes = [16, 8], strides = [1, 1]} : vector<16x32xf32> to vector<16x8xf32>
    %35 = vector.shape_cast %34 : vector<16x8xf32> to vector<2x8x8xf32>
    %36 = vector.extract_strided_slice %31 {offsets = [0, 0], sizes = [16, 8], strides = [1, 1]} : vector<16x32xf32> to vector<16x8xf32>
    %37 = vector.shape_cast %36 : vector<16x8xf32> to vector<2x8x8xf32>
    "tpu.trace_start"() <{level = 10 : i32, message = "bqd,bkd->bqk"}> : () -> ()
    %cst_19 = arith.constant dense<0.000000e+00> : vector<2x8x8xf32>
    %38 = tpu.matmul %33, %35, %cst_19 {dimension_numbers = #tpu.dot_dimension_numbers<[2], [2], [1], [1], [0, 0, 0, 1, 1, 1], [0], [0]>} : vector<2x8x8xf32>, vector<2x8x8xf32>, vector<2x8x8xf32> -> vector<2x8x8xf32>
    "tpu.trace_stop"() : () -> ()
    %cst_20 = arith.constant 0.353553385 : f32
    %39 = vector.broadcast %cst_20 : f32 to vector<2x8x8xf32>
    %40 = arith.mulf %38, %39 : vector<2x8x8xf32>
    %41 = vector.broadcast %5 : vector<2x1x8xf32> to vector<2x8x8xf32>
    %42 = arith.addf %40, %41 : vector<2x8x8xf32>
    %cst_21 = arith.constant dense<0xFF800000> : vector<2x8xf32>
    %43 = vector.multi_reduction <maximumf>, %42, %cst_21 [2] : vector<2x8x8xf32> to vector<2x8xf32>
    %44 = vector.shape_cast %43 : vector<2x8xf32> to vector<2x8x1xf32>
    %45 = vector.broadcast %44 : vector<2x8x1xf32> to vector<2x8x8xf32>
    %46 = arith.subf %42, %45 : vector<2x8x8xf32>
    %47 = math.exp %46 : vector<2x8x8xf32>
    %cst_22 = arith.constant dense<0.000000e+00> : vector<2x8xf32>
    %48 = vector.multi_reduction <add>, %47, %cst_22 [2] : vector<2x8x8xf32> to vector<2x8xf32>
    %49 = vector.shape_cast %48 : vector<2x8xf32> to vector<2x8x1xf32>
    %50 = tpu.reciprocal %49 {approx = true} : vector<2x8x1xf32> -> vector<2x8x1xf32>
    %51 = vector.broadcast %50 : vector<2x8x1xf32> to vector<2x8x8xf32>
    %52 = arith.mulf %47, %51 : vector<2x8x8xf32>
    "tpu.trace_start"() <{level = 10 : i32, message = "bqk,bkd->bqd"}> : () -> ()
    %cst_23 = arith.constant dense<0.000000e+00> : vector<2x8x8xf32>
    %53 = tpu.matmul %52, %37, %cst_23 {dimension_numbers = #tpu.dot_dimension_numbers<[2], [1], [1], [2], [0, 0, 0, 1, 1, 2], [0], [0]>} : vector<2x8x8xf32>, vector<2x8x8xf32>, vector<2x8x8xf32> -> vector<2x8x8xf32>
    "tpu.trace_stop"() : () -> ()
    %54 = vector.shape_cast %53 : vector<2x8x8xf32> to vector<16x8xf32>
    %55 = vector.extract_strided_slice %15 {offsets = [0, 8], sizes = [16, 8], strides = [1, 1]} : vector<16x32xf32> to vector<16x8xf32>
    %56 = vector.shape_cast %55 : vector<16x8xf32> to vector<2x8x8xf32>
    %57 = vector.extract_strided_slice %23 {offsets = [0, 8], sizes = [16, 8], strides = [1, 1]} : vector<16x32xf32> to vector<16x8xf32>
    %58 = vector.shape_cast %57 : vector<16x8xf32> to vector<2x8x8xf32>
    %59 = vector.extract_strided_slice %31 {offsets = [0, 8], sizes = [16, 8], strides = [1, 1]} : vector<16x32xf32> to vector<16x8xf32>
    %60 = vector.shape_cast %59 : vector<16x8xf32> to vector<2x8x8xf32>
    "tpu.trace_start"() <{level = 10 : i32, message = "bqd,bkd->bqk"}> : () -> ()
    %cst_24 = arith.constant dense<0.000000e+00> : vector<2x8x8xf32>
    %61 = tpu.matmul %56, %58, %cst_24 {dimension_numbers = #tpu.dot_dimension_numbers<[2], [2], [1], [1], [0, 0, 0, 1, 1, 1], [0], [0]>} : vector<2x8x8xf32>, vector<2x8x8xf32>, vector<2x8x8xf32> -> vector<2x8x8xf32>
    "tpu.trace_stop"() : () -> ()
    %cst_25 = arith.constant 0.353553385 : f32
    %62 = vector.broadcast %cst_25 : f32 to vector<2x8x8xf32>
    %63 = arith.mulf %61, %62 : vector<2x8x8xf32>
    %64 = vector.broadcast %5 : vector<2x1x8xf32> to vector<2x8x8xf32>
    %65 = arith.addf %63, %64 : vector<2x8x8xf32>
    %cst_26 = arith.constant dense<0xFF800000> : vector<2x8xf32>
    %66 = vector.multi_reduction <maximumf>, %65, %cst_26 [2] : vector<2x8x8xf32> to vector<2x8xf32>
    %67 = vector.shape_cast %66 : vector<2x8xf32> to vector<2x8x1xf32>
    %68 = vector.broadcast %67 : vector<2x8x1xf32> to vector<2x8x8xf32>
    %69 = arith.subf %65, %68 : vector<2x8x8xf32>
    %70 = math.exp %69 : vector<2x8x8xf32>
    %cst_27 = arith.constant dense<0.000000e+00> : vector<2x8xf32>
    %71 = vector.multi_reduction <add>, %70, %cst_27 [2] : vector<2x8x8xf32> to vector<2x8xf32>
    %72 = vector.shape_cast %71 : vector<2x8xf32> to vector<2x8x1xf32>
    %73 = tpu.reciprocal %72 {approx = true} : vector<2x8x1xf32> -> vector<2x8x1xf32>
    %74 = vector.broadcast %73 : vector<2x8x1xf32> to vector<2x8x8xf32>
    %75 = arith.mulf %70, %74 : vector<2x8x8xf32>
    "tpu.trace_start"() <{level = 10 : i32, message = "bqk,bkd->bqd"}> : () -> ()
    %cst_28 = arith.constant dense<0.000000e+00> : vector<2x8x8xf32>
    %76 = tpu.matmul %75, %60, %cst_28 {dimension_numbers = #tpu.dot_dimension_numbers<[2], [1], [1], [2], [0, 0, 0, 1, 1, 2], [0], [0]>} : vector<2x8x8xf32>, vector<2x8x8xf32>, vector<2x8x8xf32> -> vector<2x8x8xf32>
    "tpu.trace_stop"() : () -> ()
    %77 = vector.shape_cast %76 : vector<2x8x8xf32> to vector<16x8xf32>
    %78 = vector.extract_strided_slice %15 {offsets = [0, 16], sizes = [16, 8], strides = [1, 1]} : vector<16x32xf32> to vector<16x8xf32>
    %79 = vector.shape_cast %78 : vector<16x8xf32> to vector<2x8x8xf32>
    %80 = vector.extract_strided_slice %23 {offsets = [0, 16], sizes = [16, 8], strides = [1, 1]} : vector<16x32xf32> to vector<16x8xf32>
    %81 = vector.shape_cast %80 : vector<16x8xf32> to vector<2x8x8xf32>
    %82 = vector.extract_strided_slice %31 {offsets = [0, 16], sizes = [16, 8], strides = [1, 1]} : vector<16x32xf32> to vector<16x8xf32>
    %83 = vector.shape_cast %82 : vector<16x8xf32> to vector<2x8x8xf32>
    "tpu.trace_start"() <{level = 10 : i32, message = "bqd,bkd->bqk"}> : () -> ()
    %cst_29 = arith.constant dense<0.000000e+00> : vector<2x8x8xf32>
    %84 = tpu.matmul %79, %81, %cst_29 {dimension_numbers = #tpu.dot_dimension_numbers<[2], [2], [1], [1], [0, 0, 0, 1, 1, 1], [0], [0]>} : vector<2x8x8xf32>, vector<2x8x8xf32>, vector<2x8x8xf32> -> vector<2x8x8xf32>
    "tpu.trace_stop"() : () -> ()
    %cst_30 = arith.constant 0.353553385 : f32
    %85 = vector.broadcast %cst_30 : f32 to vector<2x8x8xf32>
    %86 = arith.mulf %84, %85 : vector<2x8x8xf32>
    %87 = vector.broadcast %5 : vector<2x1x8xf32> to vector<2x8x8xf32>
    %88 = arith.addf %86, %87 : vector<2x8x8xf32>
    %cst_31 = arith.constant dense<0xFF800000> : vector<2x8xf32>
    %89 = vector.multi_reduction <maximumf>, %88, %cst_31 [2] : vector<2x8x8xf32> to vector<2x8xf32>
    %90 = vector.shape_cast %89 : vector<2x8xf32> to vector<2x8x1xf32>
    %91 = vector.broadcast %90 : vector<2x8x1xf32> to vector<2x8x8xf32>
    %92 = arith.subf %88, %91 : vector<2x8x8xf32>
    %93 = math.exp %92 : vector<2x8x8xf32>
    %cst_32 = arith.constant dense<0.000000e+00> : vector<2x8xf32>
    %94 = vector.multi_reduction <add>, %93, %cst_32 [2] : vector<2x8x8xf32> to vector<2x8xf32>
    %95 = vector.shape_cast %94 : vector<2x8xf32> to vector<2x8x1xf32>
    %96 = tpu.reciprocal %95 {approx = true} : vector<2x8x1xf32> -> vector<2x8x1xf32>
    %97 = vector.broadcast %96 : vector<2x8x1xf32> to vector<2x8x8xf32>
    %98 = arith.mulf %93, %97 : vector<2x8x8xf32>
    "tpu.trace_start"() <{level = 10 : i32, message = "bqk,bkd->bqd"}> : () -> ()
    %cst_33 = arith.constant dense<0.000000e+00> : vector<2x8x8xf32>
    %99 = tpu.matmul %98, %83, %cst_33 {dimension_numbers = #tpu.dot_dimension_numbers<[2], [1], [1], [2], [0, 0, 0, 1, 1, 2], [0], [0]>} : vector<2x8x8xf32>, vector<2x8x8xf32>, vector<2x8x8xf32> -> vector<2x8x8xf32>
    "tpu.trace_stop"() : () -> ()
    %100 = vector.shape_cast %99 : vector<2x8x8xf32> to vector<16x8xf32>
    %101 = vector.extract_strided_slice %15 {offsets = [0, 24], sizes = [16, 8], strides = [1, 1]} : vector<16x32xf32> to vector<16x8xf32>
    %102 = vector.shape_cast %101 : vector<16x8xf32> to vector<2x8x8xf32>
    %103 = vector.extract_strided_slice %23 {offsets = [0, 24], sizes = [16, 8], strides = [1, 1]} : vector<16x32xf32> to vector<16x8xf32>
    %104 = vector.shape_cast %103 : vector<16x8xf32> to vector<2x8x8xf32>
    %105 = vector.extract_strided_slice %31 {offsets = [0, 24], sizes = [16, 8], strides = [1, 1]} : vector<16x32xf32> to vector<16x8xf32>
    %106 = vector.shape_cast %105 : vector<16x8xf32> to vector<2x8x8xf32>
    "tpu.trace_start"() <{level = 10 : i32, message = "bqd,bkd->bqk"}> : () -> ()
    %cst_34 = arith.constant dense<0.000000e+00> : vector<2x8x8xf32>
    %107 = tpu.matmul %102, %104, %cst_34 {dimension_numbers = #tpu.dot_dimension_numbers<[2], [2], [1], [1], [0, 0, 0, 1, 1, 1], [0], [0]>} : vector<2x8x8xf32>, vector<2x8x8xf32>, vector<2x8x8xf32> -> vector<2x8x8xf32>
    "tpu.trace_stop"() : () -> ()
    %cst_35 = arith.constant 0.353553385 : f32
    %108 = vector.broadcast %cst_35 : f32 to vector<2x8x8xf32>
    %109 = arith.mulf %107, %108 : vector<2x8x8xf32>
    %110 = vector.broadcast %5 : vector<2x1x8xf32> to vector<2x8x8xf32>
    %111 = arith.addf %109, %110 : vector<2x8x8xf32>
    %cst_36 = arith.constant dense<0xFF800000> : vector<2x8xf32>
    %112 = vector.multi_reduction <maximumf>, %111, %cst_36 [2] : vector<2x8x8xf32> to vector<2x8xf32>
    %113 = vector.shape_cast %112 : vector<2x8xf32> to vector<2x8x1xf32>
    %114 = vector.broadcast %113 : vector<2x8x1xf32> to vector<2x8x8xf32>
    %115 = arith.subf %111, %114 : vector<2x8x8xf32>
    %116 = math.exp %115 : vector<2x8x8xf32>
    %cst_37 = arith.constant dense<0.000000e+00> : vector<2x8xf32>
    %117 = vector.multi_reduction <add>, %116, %cst_37 [2] : vector<2x8x8xf32> to vector<2x8xf32>
    %118 = vector.shape_cast %117 : vector<2x8xf32> to vector<2x8x1xf32>
    %119 = tpu.reciprocal %118 {approx = true} : vector<2x8x1xf32> -> vector<2x8x1xf32>
    %120 = vector.broadcast %119 : vector<2x8x1xf32> to vector<2x8x8xf32>
    %121 = arith.mulf %116, %120 : vector<2x8x8xf32>
    "tpu.trace_start"() <{level = 10 : i32, message = "bqk,bkd->bqd"}> : () -> ()
    %cst_38 = arith.constant dense<0.000000e+00> : vector<2x8x8xf32>
    %122 = tpu.matmul %121, %106, %cst_38 {dimension_numbers = #tpu.dot_dimension_numbers<[2], [1], [1], [2], [0, 0, 0, 1, 1, 2], [0], [0]>} : vector<2x8x8xf32>, vector<2x8x8xf32>, vector<2x8x8xf32> -> vector<2x8x8xf32>
    "tpu.trace_stop"() : () -> ()
    %123 = vector.shape_cast %122 : vector<2x8x8xf32> to vector<16x8xf32>
    %124 = tpu.concatenate %54, %77, %100, %123 in 1 : vector<16x8xf32>, vector<16x8xf32>, vector<16x8xf32>, vector<16x8xf32> -> vector<16x32xf32>
    %c0_39 = arith.constant 0 : index
    %c3 = arith.constant 3 : index
    %c0_40 = arith.constant 0 : index
    %c0_41 = arith.constant 0 : index
    %125 = vector.load %arg4[%c0_39, %c3, %c0_40, %c0_41] : memref<1x4x32x32xf32, #tpu.memory_space<vmem>>, vector<1x1x32x32xf32>
    %126 = vector.shape_cast %125 : vector<1x1x32x32xf32> to vector<32x32xf32>
    %cst_42 = arith.constant dense<0.000000e+00> : vector<16x32xf32>
    %127 = tpu.matmul %124, %126, %cst_42 {dimension_numbers = #tpu.dot_dimension_numbers<[1], [0], [0], [1], [0, 0, 1, 1], [], []>} : vector<16x32xf32>, vector<32x32xf32>, vector<16x32xf32> -> vector<16x32xf32>
    %128 = vector.extract_strided_slice %7 {offsets = [3, 0], sizes = [1, 32], strides = [1, 1]} : vector<10x64xf32> to vector<1x32xf32>
    %129 = vector.shape_cast %128 : vector<1x32xf32> to vector<32xf32>
    %130 = vector.shape_cast %129 : vector<32xf32> to vector<1x32xf32>
    %131 = vector.broadcast %130 : vector<1x32xf32> to vector<16x32xf32>
    %132 = arith.addf %127, %131 : vector<16x32xf32>
    %133 = arith.addf %3, %132 : vector<16x32xf32>
    %134 = vector.extract_strided_slice %7 {offsets = [4, 0], sizes = [1, 32], strides = [1, 1]} : vector<10x64xf32> to vector<1x32xf32>
    %135 = vector.shape_cast %134 : vector<1x32xf32> to vector<32xf32>
    %136 = vector.extract_strided_slice %7 {offsets = [5, 0], sizes = [1, 32], strides = [1, 1]} : vector<10x64xf32> to vector<1x32xf32>
    %137 = vector.shape_cast %136 : vector<1x32xf32> to vector<32xf32>
    %cst_43 = arith.constant dense<0.000000e+00> : vector<16xf32>
    %138 = vector.multi_reduction <add>, %133, %cst_43 [1] : vector<16x32xf32> to vector<16xf32>
    %139 = vector.shape_cast %138 : vector<16xf32> to vector<16x1xf32>
    %cst_44 = arith.constant 3.200000e+01 : f32
    %140 = vector.broadcast %cst_44 : f32 to vector<16x1xf32>
    %141 = arith.divf %139, %140 : vector<16x1xf32>
    %142 = vector.broadcast %141 : vector<16x1xf32> to vector<16x32xf32>
    %143 = arith.subf %133, %142 : vector<16x32xf32>
    %144 = arith.mulf %143, %143 : vector<16x32xf32>
    %cst_45 = arith.constant dense<0.000000e+00> : vector<16xf32>
    %145 = vector.multi_reduction <add>, %144, %cst_45 [1] : vector<16x32xf32> to vector<16xf32>
    %146 = vector.shape_cast %145 : vector<16xf32> to vector<16x1xf32>
    %cst_46 = arith.constant 3.200000e+01 : f32
    %147 = vector.broadcast %cst_46 : f32 to vector<16x1xf32>
    %148 = arith.divf %146, %147 : vector<16x1xf32>
    %149 = vector.broadcast %141 : vector<16x1xf32> to vector<16x32xf32>
    %150 = arith.subf %133, %149 : vector<16x32xf32>
    %cst_47 = arith.constant 9.99999996E-13 : f32
    %151 = vector.broadcast %cst_47 : f32 to vector<16x1xf32>
    %152 = arith.addf %148, %151 : vector<16x1xf32>
    %153 = math.rsqrt %152 : vector<16x1xf32>
    %154 = vector.broadcast %153 : vector<16x1xf32> to vector<16x32xf32>
    %155 = arith.mulf %150, %154 : vector<16x32xf32>
    %156 = vector.shape_cast %135 : vector<32xf32> to vector<1x32xf32>
    %157 = vector.broadcast %156 : vector<1x32xf32> to vector<16x32xf32>
    %158 = arith.mulf %155, %157 : vector<16x32xf32>
    %159 = vector.shape_cast %137 : vector<32xf32> to vector<1x32xf32>
    %160 = vector.broadcast %159 : vector<1x32xf32> to vector<16x32xf32>
    %161 = arith.addf %158, %160 : vector<16x32xf32>
    %c0_48 = arith.constant 0 : index
    %c0_49 = arith.constant 0 : index
    %c0_50 = arith.constant 0 : index
    %162 = vector.load %arg5[%c0_48, %c0_49, %c0_50] : memref<1x32x64xf32, #tpu.memory_space<vmem>>, vector<1x32x64xf32>
    %163 = vector.shape_cast %162 : vector<1x32x64xf32> to vector<32x64xf32>
    %cst_51 = arith.constant dense<0.000000e+00> : vector<16x64xf32>
    %164 = tpu.matmul %161, %163, %cst_51 {dimension_numbers = #tpu.dot_dimension_numbers<[1], [0], [0], [1], [0, 0, 1, 1], [], []>} : vector<16x32xf32>, vector<32x64xf32>, vector<16x64xf32> -> vector<16x64xf32>
    %165 = vector.extract_strided_slice %7 {offsets = [6, 0], sizes = [1, 64], strides = [1, 1]} : vector<10x64xf32> to vector<1x64xf32>
    %166 = vector.shape_cast %165 : vector<1x64xf32> to vector<64xf32>
    %167 = vector.shape_cast %166 : vector<64xf32> to vector<1x64xf32>
    %168 = vector.broadcast %167 : vector<1x64xf32> to vector<16x64xf32>
    %169 = arith.addf %164, %168 : vector<16x64xf32>
    %cst_52 = arith.constant 5.000000e-01 : f32
    %170 = vector.broadcast %cst_52 : f32 to vector<16x64xf32>
    %171 = arith.mulf %170, %169 : vector<16x64xf32>
    %cst_53 = arith.constant 4.471500e-02 : f32
    %172 = vector.broadcast %cst_53 : f32 to vector<16x64xf32>
    %173 = arith.mulf %172, %169 : vector<16x64xf32>
    %174 = arith.mulf %173, %169 : vector<16x64xf32>
    %175 = arith.mulf %174, %169 : vector<16x64xf32>
    %176 = arith.addf %169, %175 : vector<16x64xf32>
    %cst_54 = arith.constant 0.797884583 : f32
    %177 = vector.broadcast %cst_54 : f32 to vector<16x64xf32>
    %178 = arith.mulf %177, %176 : vector<16x64xf32>
    %179 = math.tanh %178 : vector<16x64xf32>
    %cst_55 = arith.constant 1.000000e+00 : f32
    %180 = vector.broadcast %cst_55 : f32 to vector<16x64xf32>
    %181 = arith.addf %180, %179 : vector<16x64xf32>
    %182 = arith.mulf %171, %181 : vector<16x64xf32>
    %c0_56 = arith.constant 0 : index
    %c0_57 = arith.constant 0 : index
    %c0_58 = arith.constant 0 : index
    %183 = vector.load %arg6[%c0_56, %c0_57, %c0_58] : memref<1x64x32xf32, #tpu.memory_space<vmem>>, vector<1x64x32xf32>
    %184 = vector.shape_cast %183 : vector<1x64x32xf32> to vector<64x32xf32>
    %cst_59 = arith.constant dense<0.000000e+00> : vector<16x32xf32>
    %185 = tpu.matmul %182, %184, %cst_59 {dimension_numbers = #tpu.dot_dimension_numbers<[1], [0], [0], [1], [0, 0, 1, 1], [], []>} : vector<16x64xf32>, vector<64x32xf32>, vector<16x32xf32> -> vector<16x32xf32>
    %186 = vector.extract_strided_slice %7 {offsets = [7, 0], sizes = [1, 32], strides = [1, 1]} : vector<10x64xf32> to vector<1x32xf32>
    %187 = vector.shape_cast %186 : vector<1x32xf32> to vector<32xf32>
    %188 = vector.shape_cast %187 : vector<32xf32> to vector<1x32xf32>
    %189 = vector.broadcast %188 : vector<1x32xf32> to vector<16x32xf32>
    %190 = arith.addf %185, %189 : vector<16x32xf32>
    %191 = arith.addf %161, %190 : vector<16x32xf32>
    %192 = vector.extract_strided_slice %7 {offsets = [8, 0], sizes = [1, 32], strides = [1, 1]} : vector<10x64xf32> to vector<1x32xf32>
    %193 = vector.shape_cast %192 : vector<1x32xf32> to vector<32xf32>
    %194 = vector.extract_strided_slice %7 {offsets = [9, 0], sizes = [1, 32], strides = [1, 1]} : vector<10x64xf32> to vector<1x32xf32>
    %195 = vector.shape_cast %194 : vector<1x32xf32> to vector<32xf32>
    %cst_60 = arith.constant dense<0.000000e+00> : vector<16xf32>
    %196 = vector.multi_reduction <add>, %191, %cst_60 [1] : vector<16x32xf32> to vector<16xf32>
    %197 = vector.shape_cast %196 : vector<16xf32> to vector<16x1xf32>
    %cst_61 = arith.constant 3.200000e+01 : f32
    %198 = vector.broadcast %cst_61 : f32 to vector<16x1xf32>
    %199 = arith.divf %197, %198 : vector<16x1xf32>
    %200 = vector.broadcast %199 : vector<16x1xf32> to vector<16x32xf32>
    %201 = arith.subf %191, %200 : vector<16x32xf32>
    %202 = arith.mulf %201, %201 : vector<16x32xf32>
    %cst_62 = arith.constant dense<0.000000e+00> : vector<16xf32>
    %203 = vector.multi_reduction <add>, %202, %cst_62 [1] : vector<16x32xf32> to vector<16xf32>
    %204 = vector.shape_cast %203 : vector<16xf32> to vector<16x1xf32>
    %cst_63 = arith.constant 3.200000e+01 : f32
    %205 = vector.broadcast %cst_63 : f32 to vector<16x1xf32>
    %206 = arith.divf %204, %205 : vector<16x1xf32>
    %207 = vector.broadcast %199 : vector<16x1xf32> to vector<16x32xf32>
    %208 = arith.subf %191, %207 : vector<16x32xf32>
    %cst_64 = arith.constant 9.99999996E-13 : f32
    %209 = vector.broadcast %cst_64 : f32 to vector<16x1xf32>
    %210 = arith.addf %206, %209 : vector<16x1xf32>
    %211 = math.rsqrt %210 : vector<16x1xf32>
    %212 = vector.broadcast %211 : vector<16x1xf32> to vector<16x32xf32>
    %213 = arith.mulf %208, %212 : vector<16x32xf32>
    %214 = vector.shape_cast %193 : vector<32xf32> to vector<1x32xf32>
    %215 = vector.broadcast %214 : vector<1x32xf32> to vector<16x32xf32>
    %216 = arith.mulf %213, %215 : vector<16x32xf32>
    %217 = vector.shape_cast %195 : vector<32xf32> to vector<1x32xf32>
    %218 = vector.broadcast %217 : vector<1x32xf32> to vector<16x32xf32>
    %219 = arith.addf %216, %218 : vector<16x32xf32>
    %c0_65 = arith.constant 0 : index
    %c0_66 = arith.constant 0 : index
    %220 = vector.load %arg11[%c0_65, %c0_66] : memref<16x32xf32, #tpu.memory_space<vmem>>, vector<16x32xf32>
    tpu.vector_store %arg11[%c0_65, %c0_66], %219 {strides = array<i32>} : memref<16x32xf32, #tpu.memory_space<vmem>>, vector<16x32xf32>,
    %c1_i32 = arith.constant 1 : i32
    %221 = arith.cmpi eq, %arg0, %c1_i32 : i32
    %222 = arith.extui %221 : i1 to i32
    %c0_i32_67 = arith.constant 0 : i32
    %223 = arith.cmpi ne, %222, %c0_i32_67 : i32
    scf.if %223 {
      %c0_68 = arith.constant 0 : index
      %c0_69 = arith.constant 0 : index
      %224 = vector.load %arg9[%c0_68, %c0_69] : memref<16x32xf32, #tpu.memory_space<vmem>>, vector<16x32xf32>
      tpu.vector_store %arg9[%c0_68, %c0_69], %219 {strides = array<i32>} : memref<16x32xf32, #tpu.memory_space<vmem>>, vector<16x32xf32>,
      %225 = vector.shape_cast %219 : vector<16x32xf32> to vector<2x8x32xf32>
      %226 = vector.extract_strided_slice %225 {offsets = [0, 0, 0], sizes = [2, 1, 32], strides = [1, 1, 1]} : vector<2x8x32xf32> to vector<2x1x32xf32>
      %227 = vector.shape_cast %226 : vector<2x1x32xf32> to vector<2x32xf32>
      %c0_70 = arith.constant 0 : index
      %c0_71 = arith.constant 0 : index
      %228 = vector.load %arg8[%c0_70, %c0_71] : memref<32x32xf32, #tpu.memory_space<vmem>>, vector<32x32xf32>
      %cst_72 = arith.constant dense<0.000000e+00> : vector<2x32xf32>
      %229 = tpu.matmul %227, %228, %cst_72 {dimension_numbers = #tpu.dot_dimension_numbers<[1], [0], [0], [1], [0, 0, 1, 1], [], []>} : vector<2x32xf32>, vector<32x32xf32>, vector<2x32xf32> -> vector<2x32xf32>
      %c2_73 = arith.constant 2 : index
      %c0_74 = arith.constant 0 : index
      %230 = vector.load %arg3[%c2_73, %c0_74] : memref<3x32xf32, #tpu.memory_space<vmem>>, vector<1x32xf32>
      %231 = vector.shape_cast %230 : vector<1x32xf32> to vector<32xf32>
      %232 = vector.shape_cast %231 : vector<32xf32> to vector<1x32xf32>
      %233 = vector.broadcast %232 : vector<1x32xf32> to vector<2x32xf32>
      %234 = arith.addf %229, %233 : vector<2x32xf32>
      %235 = math.tanh %234 : vector<2x32xf32>
      %c0_75 = arith.constant 0 : index
      %c0_76 = arith.constant 0 : index
      %236 = vector.load %arg10[%c0_75, %c0_76] : memref<2x32xf32, #tpu.memory_space<vmem>>, vector<2x32xf32>
      tpu.vector_store %arg10[%c0_75, %c0_76], %235 {strides = array<i32>} : memref<2x32xf32, #tpu.memory_space<vmem>>, vector<2x32xf32>,
    } else {
    }
    return
  }
  func.func @transform_0(%arg0: i32) -> (i32, i32) {
    %c0_i32 = arith.constant 0 : i32
    %c0_i32_0 = arith.constant 0 : i32
    %c0_i32_1 = arith.constant 0 : i32
    return %c0_i32, %c0_i32_0 : i32, i32
  }
  func.func @transform_1(%arg0: i32) -> (i32, i32) {
    %c0_i32 = arith.constant 0 : i32
    %c0_i32_0 = arith.constant 0 : i32
    %c0_i32_1 = arith.constant 0 : i32
    return %c0_i32, %c0_i32_0 : i32, i32
  }
  func.func @transform_2(%arg0: i32) -> (i32, i32) {
    %c0_i32 = arith.constant 0 : i32
    %c0_i32_0 = arith.constant 0 : i32
    %c0_i32_1 = arith.constant 0 : i32
    return %c0_i32, %c0_i32_0 : i32, i32
  }
  func.func @transform_3(%arg0: i32) -> (i32, i32, i32, i32) {
    %c0_i32 = arith.constant 0 : i32
    %c0_i32_0 = arith.constant 0 : i32
    %c0_i32_1 = arith.constant 0 : i32
    %c0_i32_2 = arith.constant 0 : i32
    return %arg0, %c0_i32, %c0_i32_0, %c0_i32_1 : i32, i32, i32, i32
  }
  func.func @transform_4(%arg0: i32) -> (i32, i32, i32) {
    %c0_i32 = arith.constant 0 : i32
    %c0_i32_0 = arith.constant 0 : i32
    %c0_i32_1 = arith.constant 0 : i32
    return %arg0, %c0_i32, %c0_i32_0 : i32, i32, i32
  }
  func.func @transform_5(%arg0: i32) -> (i32, i32, i32) {
    %c0_i32 = arith.constant 0 : i32
    %c0_i32_0 = arith.constant 0 : i32
    %c0_i32_1 = arith.constant 0 : i32
    return %arg0, %c0_i32, %c0_i32_0 : i32, i32, i32
  }
  func.func @transform_6(%arg0: i32) -> (i32, i32, i32) {
    %c0_i32 = arith.constant 0 : i32
    %c0_i32_0 = arith.constant 0 : i32
    %c0_i32_1 = arith.constant 0 : i32
    return %arg0, %c0_i32, %c0_i32_0 : i32, i32, i32
  }
  func.func @transform_7(%arg0: i32) -> (i32, i32) {
    %c0_i32 = arith.constant 0 : i32
    %c0_i32_0 = arith.constant 0 : i32
    %c0_i32_1 = arith.constant 0 : i32
    return %c0_i32, %c0_i32_0 : i32, i32
  }
  func.func @transform_8(%arg0: i32) -> (i32, i32) {
    %c0_i32 = arith.constant 0 : i32
    %c0_i32_0 = arith.constant 0 : i32
    %c0_i32_1 = arith.constant 0 : i32
    return %c0_i32, %c0_i32_0 : i32, i32
  }
  func.func @transform_9(%arg0: i32) -> (i32, i32) {
    %c0_i32 = arith.constant 0 : i32
    %c0_i32_0 = arith.constant 0 : i32
    %c0_i32_1 = arith.constant 0 : i32
    return %c0_i32, %c0_i32_0 : i32, i32
  }
}

</mosaic_0001>

<bundles_post_ra>
// kernel: text_model_forward.1
= control target key start
LH: loop header
LB: loop body
LE: loop exit
PB: predicated region body
PF: predicated region fallthrough
CT: control target
= control target key end

     0   :  { %15 = vsyncpa [#allocation4], 0  ;;  %s3644_s0 = inlined_call_operand.vmem [shape: f32[16,32], index: 0, kind: input, shape index: {}]   ;;  %s3645_s1 = inlined_call_operand.vmem [shape: f32[2,8], index: 1, kind: input, shape index: {}]   ;;  %s3646_s2 = inlined_call_operand.vmem [shape: f32[3,32], index: 2, kind: input, shape index: {}]   ;;  %s3647_s3 = inlined_call_operand.vmem [shape: f32[2,4,32,32], index: 3, kind: input, shape index: {}]   ;;  %s3648_s4 = inlined_call_operand.vmem [shape: f32[2,32,64], index: 4, kind: input, shape index: {}]   ;;  %s3649_s5 = inlined_call_operand.vmem [shape: f32[2,64,32], index: 5, kind: input, shape index: {}]   ;;  %s3650_s6 = inlined_call_operand.vmem [shape: f32[2,10,64], index: 6, kind: input, shape index: {}]   ;;  %s3651_s7 = inlined_call_operand.vmem [shape: f32[32,32], index: 7, kind: input, shape index: {}]   ;;  %s3652_s8 = inlined_call_operand.hbm [shape: f32[16,32], index: 8, kind: output, shape index: {0}]   ;;  %s3653_s9 = inlined_call_operand.hbm [shape: f32[2,32], index: 9, kind: output, shape index: {1}]  }
   0x1   :  { %16 = vsyncpa [#allocation6], 0  ;;  %s3259_s30 = smov 0  }
   0x2 LB: > { %s3265_s10 = sadd.s32 4294967295, %s3192_s30   ;;  %p2663_p0 = scmp.ge.s32.totalorder %s3192_s30, 1  ;;  %s3192_s30 = sphi %s3259_s30, %s22_s30  }
   0x3   : > { %p312_p1 = scmp.lt.s32.totalorder %s3192_s30, 3 }
   0x5   : > { %p313_p2 = pnand %p2663_p0, %p312_p1 }
   0x6   : > { %p358_p3 = scmp.lt.s32.totalorder (!%p313_p2), %s3265_s10, 1  ;;  %p2672_p4 = scmp.ne.s32.totalorder (!%p313_p2), %s3265_s10, 0 }
   0x7   : > { %316 = sbr.rel (%p313_p2) target bundleno = 4619 (0x120b), region = 52 }
   0xe   : > { %s359_s11 = scalar_select %p358_p3, %s3265_s10, 1 }
   0xf   : > { %381 = sbr.rel (%p2672_p4) target bundleno = 334 (0x14e), region = 56  ;;  %v382_v0 = vld [vmem:[%s3644_s0] sm:$0xff] (!%p2672_p4)  ;;  %vm386_vm0 = vcmask (!%p2672_p4), 261120   ;;  %v383_v1 = vld [vmem:[%s3644_s0 + $0x8] sm:$0xff] (!%p2672_p4) }
  0x10   : > { %s2733_s12 = sshll.u32 %s359_s11, 7  ;;  %s2734_s13 = sshll.u32 %s359_s11, 5  ;;  %v387_v2 = vsel (!%p2672_p4), %vm386_vm0, %v382_v0, 0.0  ;;  %v390_v3 = vsel (!%p2672_p4), %vm386_vm0, %v383_v1, 0.0  ;;  %v2673_v21 = vld [vmem:[%s3646_s2] ss:$0 sm:$0xff] (!%p2672_p4) }
  0x11   : > { %s3274_s16 = scalar_lea.vmem %s3647_s3, %s2733_s12  ;;  %s3279_s19 = scalar_lea.vmem %s3648_s4, %s2734_s13  ;;  %388 = vadd.xlane.f32.xlu0 (!%p2672_p4), %v387_v2  ;;  %v2674_v23 = vld [vmem:[%s3646_s2 + $0x1] ss:$0 sm:$0xff] (!%p2672_p4) }
  0x12   : > { %s2735_s20 = sshll.u32 %s359_s11, 6  ;;  %s2736_s21 = sshll.u32 %s359_s11, 4 }
  0x13   : > { %s3284_s24 = scalar_lea.vmem %s3649_s5, %s2735_s20  ;;  %s3289_s27 = scalar_lea.vmem %s3650_s6, %s2736_s21 }
  0x15   : > { %391 = vadd.xlane.f32.xlu0 (!%p2672_p4), %v390_v3 }
  0x9e   : > { %v389_v4 = vpop.xlane.xlu0 %388 }
  0x9f   : > { %v394_v5 = vmul.f32 0.03125, %v389_v4 }
  0xa1   : > { %v396_v6 = vsub.f32 %v382_v0, %v394_v5 }
  0xa2   : > { %v392_v7 = vpop.xlane.xlu0 %391 }
  0xa3   : > { %v395_v8 = vmul.f32 0.03125, %v392_v7  ;;  %v398_v9 = vmul.f32 %v396_v6, %v396_v6 }
  0xa5   : > { %v397_v10 = vsub.f32 %v383_v1, %v395_v8  ;;  %v400_v11 = vsel %vm386_vm0, %v398_v9, 0.0 }
  0xa6   : > { %401 = vadd.xlane.f32.xlu1 %v400_v11 }
  0xa7   : > { %v399_v12 = vmul.f32 %v397_v10, %v397_v10 }
  0xa9   : > { %v403_v13 = vsel %vm386_vm0, %v399_v12, 0.0 }
  0xaa   : > { %404 = vadd.xlane.f32.xlu1 %v403_v13 }
 0x133   : > { %v402_v14 = vpop.xlane.xlu1 %401 }
 0x134   : > { %v406_v15 = vmul.f32 0.03125, %v402_v14 }
 0x136   : > { %v408_v16 = vadd.f32 1e-12, %v406_v15 }
 0x137   : > { %v405_v17 = vpop.xlane.xlu1 %404 }
 0x138   : > { %3076 = vrsqrt.f32 %v408_v16  ;;  %v407_v18 = vmul.f32 0.03125, %v405_v17 }
 0x13a   : > { %v409_v19 = vadd.f32 1e-12, %v407_v18 }
 0x13c   : > { %3078 = vrsqrt.f32 %v409_v19 }
 0x142   : > { %v3077_v20 = vpop.eup %3076 }
 0x143   : > { %v412_v22 = vmul.f32 %v3077_v20, %v396_v6 }
 0x145   : > { %v418_v24 = vmul.f32 %v2673_v21, %v412_v22 }
 0x146   : > { %v3079_v25 = vpop.eup %3078 }
 0x147   : > { %v424_v26 = vadd.f32 %v2674_v23, %v418_v24  ;;  %v413_v27 = vmul.f32 %v3079_v25, %v397_v10 }
 0x149   : > { %426 = vst.msk [vmem:[#allocation2] sm:$0xff] %vm386_vm0, %v424_v26  ;;  %v419_v28 = vmul.f32 %v2673_v21, %v413_v27 }
 0x14b   : > { %v425_v29 = vadd.f32 %v2674_v23, %v419_v28 }
 0x14d   : > { %427 = vst.msk [vmem:[#allocation2 + $0x8] sm:$0xff] %vm386_vm0, %v425_v29 }
 0x14e PF: > { %v456_v30 = vld [vmem:[%s3274_s16] sm:$0xff]  ;;  %v457_v31 = vld [vmem:[%s3274_s16 + $0x8] sm:$0xff]  ;;  %v458_v32 = vld [vmem:[%s3274_s16 + $0x10] sm:$0xff]  ;;  %vm464_vm1 = vcmask 261120   ;;  %v3194_v44 = vmov 0.0   ;;  %vm3195_vm2 = vmmov 0   ;;  %v443_v45 = vlaneseq }
 0x14f   : > { %v2979_v33 = vpack.c.bf16 %v457_v31, %v456_v30  ;;  %v459_v34 = vld [vmem:[%s3274_s16 + $0x18] sm:$0xff]  ;;  %v2678_v37 = vld [vmem:[%s3274_s16 + $0x20] sm:$0xff]  ;;  %v2679_v38 = vld [vmem:[%s3274_s16 + $0x28] sm:$0xff]  ;;  %vm714_vm3 = vcmask 64512   ;;  %s3196_s18 = smov 120   ;;  %s3198_s22 = smov 112  }
 0x150   : > { %v3314_v35 = vld [vmem:[#allocation2] sm:$0xff]  ;;  %v2983_v36 = vpack.c.bf16 %v459_v34, %v458_v32  ;;  %v2987_v39 = vpack.c.bf16 %v2679_v38, %v2678_v37  ;;  %v2680_v40 = vld [vmem:[%s3274_s16 + $0x30] sm:$0xff]  ;;  %v2681_v41 = vld [vmem:[%s3274_s16 + $0x38] sm:$0xff]  ;;  %v3335_v46 = vshrl.u32 %v443_v45, 7  ;;  %v3197_v2 = vmov 1966171168  }
 0x151   : > { %2822 = vmatprep.mubr.msk.f32.mxu1 %vm464_vm1, %v3314_v35  ;;  %2844 = vmatprep.mubr.msk.f32.mxu0 %vm464_vm1, %v3314_v35  ;;  %v2991_v43 = vpack.c.bf16 %v2681_v41, %v2680_v40  ;;  %v3339_v50 = vld [vmem:[%s3289_s27] sm:$0xff]  ;;  %v2685_v61 = vld [vmem:[%s3274_s16 + $0x48] sm:$0xff]  ;;  %v2686_v62 = vld [vmem:[%s3274_s16 + $0x50] sm:$0xff]  ;;  %v441_v3 = vunpack.c.l.s4 %v3197_v2  ;;  %s3199_s23 = smov 104   ;;  %s3200_s25 = smov 8   ;;  %vm2082_vm4 = vcmask 195584  }
 0x152   : > { %2980 = vmatprep.subr.bf16.mxu1 %v2979_v33  ;;  %v553_v49 = vsub.s32 1, %v3335_v46  ;;  %v3342_v51 = vsub.s32 0, %v3335_v46  ;;  %v2684_v60 = vld [vmem:[%s3274_s16 + $0x40] sm:$0xff]  ;;  %v2687_v0 = vld [vmem:[%s3274_s16 + $0x58] sm:$0xff]  ;;  %v637_v32 = vsub.s32 2, %v3335_v46  ;;  %s3201_s26 = smov 16  }
 0x153   : > { %2982 = vmatpush3.bf16.msra.mxu1 %v2979_v33  ;;  %v2995_v63 = vpack.c.bf16 %v2685_v61, %v2684_v60  ;;  %v2999_v1 = vpack.c.bf16 %v2687_v0, %v2686_v62  ;;  %v442_v4 = vunpack.c.0.s8 %v441_v3  ;;  %v2675_v6 = vld.sshfl [vmem:[%s3645_s1] sm:$0x11 pattern:$0x75316420]  ;;  %s3202_s28 = smov 24   ;;  %vm2079_vm5 = vcmask 130048  }
 0x154   : > { %2984 = vmatprep.subr.bf16.mxu1 %v2983_v36  ;;  %v3324_v42 = vld [vmem:[#allocation2 + $0x8] sm:$0xff]  ;;  %v554_v52 = vrot.slane %v3339_v50, %v553_v49  ;;  %v463_v54 = vrot.slane %v3339_v50, %v3342_v51  ;;  %v439_v7 = vcombine.high %v2675_v6, %v2675_v6  ;;  %v638_v33 = vrot.slane %v3339_v50, %v637_v32  ;;  %p2724_p5 = scmp.ne.s32.totalorder %s3265_s10, 1 }
 0x155   : > { %2996 = vmatprep.subr.bf16.mxu0 %v2995_v63  ;;  %v445_v5 = vsub.s32 %v442_v4, %v3335_v46  ;;  %vm2335_vm6 = vcmask 523264   ;;  %vm3204_vm7 = vmmov (!%p2724_p5), 0   ;;  %vm2477_vm8 = vcmask (!%p2724_p5), 1041409  }
 0x156   : > { %2998 = vmatpush3.bf16.msra.mxu0 %v2995_v63  ;;  %vm2552_vm9 = vcmask (!%p2724_p5), 254976  }
 0x157   : > { %2986 = vmatpush3.bf16.msra.mxu1 %v2983_v36  ;;  %3000 = vmatprep.subr.bf16.mxu0 %v2999_v1  ;;  %v446_v8 = vrot.slane %v2675_v6, %v445_v5  ;;  %v453_v10 = vrot.slane %v439_v7, %v445_v5 }
 0x158   : > { %2988 = vmatprep.subr.bf16.mxu1 %v2987_v39 }
 0x159   : > { %v3389_v9 = vrot.slane %v446_v8, %v3342_v51  ;;  %v3393_v15 = vrot.slane %v453_v10, %v3342_v51 }
 0x15a   : > { %2823 = vmatmul.mubr.msk.f32.vlgmr.msra.gmra.mrb[0].mxu1 %vm464_vm1, %v3324_v42  ;;  %3002 = vmatpush3.bf16.msra.mxu0 %v2999_v1 }
 0x15b   : > { %2990 = vmatpush3.bf16.msra.mxu1 %v2987_v39  ;;  %2833 = vmatprep.mubr.msk.f32.mxu1 %vm464_vm1, %v3314_v35 }
 0x15c   : > { %2992 = vmatprep.subr.bf16.mxu1 %v2991_v43  ;;  %2857 = vmatprep.subr.mxu0 %v3194_v44 }
 0x15d   : > { %2845 = vmatmul.mubr.msk.f32.vlgmr.msra.gmra.mrb[0].mxu0 %vm464_vm1, %v3324_v42 }
 0x15e   : > { %2859 = vmatprep.mubr.msk.f32.mxu0 %vm3195_vm2, %v3194_v44 }
 0x15f   : > { %2994 = vmatpush3.bf16.msra.mxu1 %v2991_v43 }
 0x160   : > { %2847 = vmatprep.subr.mxu1 %v3194_v44 }
 0x162   : > { %2834 = vmatmul.mubr.msk.f32.vlgmr.msra.gmra.mrb[2].mxu1 %vm464_vm1, %v3324_v42 }
 0x163   : > { %2849 = vmatprep.mubr.msk.f32.mxu1 %vm3195_vm2, %v3194_v44 }
 0x22d   : > { %v2824_v47 = vpop.f32.mrb[0].mxu1 }
 0x22e   : > { %v537_v48 = vpop.f32.mrb[1].mxu1  ;;  %v3368_v59 = vadd.f32 %v2824_v47, %v463_v54 }
 0x22f   : > { %v3357_v58 = vadd.f32 %v537_v48, %v463_v54 }
 0x230   : > { %v2846_v34 = vpop.f32.mrb[0].mxu0 }
 0x231   : > { %v705_v36 = vpop.f32.mrb[1].mxu0  ;;  %v3404_v37 = vadd.f32 %v2846_v34, %v638_v33 }
 0x232   : > { %v3406_v38 = vadd.f32 %v705_v36, %v638_v33 }
 0x234   : > { %2858 = vmatpush3.msra.mxu0 %v3406_v38 }
 0x235   : > { %v2835_v53 = vpop.f32.mrb[2].mxu1  ;;  %2867 = vmatprep.subr.mxu0 %v3194_v44 }
 0x236   : > { %v3349_v55 = vadd.f32 %v2835_v53, %v554_v52  ;;  %v621_v56 = vpop.f32.mrb[3].mxu1 }
 0x237   : > { %v3351_v57 = vadd.f32 %v621_v56, %v554_v52 }
 0x238   : > { %1129 = vrot.lane.b32.xlu1 %v3349_v55, %s3196_s18 }
 0x239   : > { %2848 = vmatpush3.xpose.msk.msra.mxu1 %vm714_vm3, %v3351_v57 }
 0x23a   : > { %2852 = vmatprep.subr.mxu1 %v3194_v44 }
 0x23c   : > { %1049 = vrot.lane.b32.xlu1 %v3357_v58, %s3196_s18  ;;  %2850 = vmatmul.mubr.msk.f32.vlgmr.msra.gmra.mrb[4].mxu1 %vm714_vm3, %v3357_v58 }
 0x23d   : > { %2853 = vmatpush3.xpose.msk.msra.mxu1 %vm714_vm3, %v3349_v55  ;;  %2854 = vmatprep.mubr.msk.f32.mxu1 %vm3195_vm2, %v3194_v44 }
 0x23e   : > { %2862 = vmatprep.subr.mxu1 %v3194_v44 }
 0x240   : > { %2855 = vmatmul.mubr.msk.f32.vlgmr.msra.gmra.mrb[6].mxu1 %vm714_vm3, %v3368_v59 }
 0x241   : > { %2864 = vmatprep.mubr.msk.f32.mxu1 %vm3195_vm2, %v3194_v44  ;;  %2863 = vmatpush3.msra.mxu1 %v3404_v37 }
 0x242   : > { %2872 = vmatprep.subr.mxu1 %v3194_v44 }
 0x2aa   : > { %v1130_v39 = vpop.permute.xlu1 %1129 }
 0x2ae   : > { %v1050_v40 = vpop.permute.xlu1 %1049 }
 0x30f   : > { %v787_v11 = vpop.f32.mrb[4].mxu1 }
 0x310   : > { %v867_v12 = vmul.f32 0.35355338, %v787_v11  ;;  %v2851_v13 = vpop.f32.mrb[5].mxu1 }
 0x312   : > { %v879_v14 = vadd.f32 %v3389_v9, %v867_v12 }
 0x313   : > { %v863_v16 = vpop.f32.mrb[6].mxu1 }
 0x314   : > { %v868_v17 = vmul.f32 0.35355338, %v863_v16  ;;  %v2856_v18 = vpop.f32.mrb[7].mxu1  ;;  %v881_v19 = vsel %vm714_vm3, %v879_v14, -inf }
 0x315   : > { %882 = vmax.xlane.f32.xlu0 %v881_v19 }
 0x316   : > { %v880_v20 = vadd.f32 %v3393_v15, %v868_v17 }
 0x318   : > { %v884_v21 = vsel %vm714_vm3, %v880_v20, -inf }
 0x319   : > { %885 = vmax.xlane.f32.xlu0 %v884_v21 }
 0x32f   : > { %1051 = vrot.lane.b32.xlu0 %v3351_v57, %s3196_s18 }
 0x3a2   : > { %v883_v22 = vpop.xlane.xlu0 %882 }
 0x3a3   : > { %v887_v23 = vsub.f32 %v879_v14, %v883_v22 }
 0x3a5   : > { %v889_v24 = vmul.f32 1.442695, %v887_v23 }
 0x3a6   : > { %v886_v25 = vpop.xlane.xlu0 %885 }
 0x3a7   : > { %3080 = vpow2.f32 %v889_v24  ;;  %v888_v26 = vsub.f32 %v880_v20, %v886_v25 }
 0x3a9   : > { %v891_v27 = vmul.f32 1.442695, %v888_v26 }
 0x3aa   : > { %v1052_v48 = vpop.permute.xlu0 %1051 }
 0x3ab   : > { %3082 = vpow2.f32 %v891_v27 }
 0x3b1   : > { %v3081_v28 = vpop.eup %3080 }
 0x3b2   : > { %v893_v29 = vsel %vm714_vm3, %v3081_v28, 0.0 }
 0x3b3   : > { %894 = vadd.xlane.f32.xlu1 %v893_v29 }
 0x3b5   : > { %v3083_v30 = vpop.eup %3082 }
 0x3b6   : > { %v896_v31 = vsel %vm714_vm3, %v3083_v30, 0.0 }
 0x3b7   : > { %897 = vadd.xlane.f32.xlu1 %v896_v31 }
 0x3c8   : > { %1127 = vrot.lane.b32.xlu1 %v3368_v59, %s3196_s18 }
 0x440   : > { %v895_v41 = vpop.xlane.xlu1 %894 }
 0x441   : > { %3084 = vrcp.f32 %v895_v41 }
 0x444   : > { %v898_v43 = vpop.xlane.xlu1 %897 }
 0x445   : > { %3086 = vrcp.f32 %v898_v43 }
 0x448   : > { %v1128_v54 = vpop.permute.xlu1 %1127 }
 0x44b   : > { %v3085_v45 = vpop.eup %3084 }
 0x44c   : > { %v901_v47 = vmul.f32 %v3085_v45, %v3081_v28 }
 0x44e   : > { %2860 = vmatmul.mubr.msk.f32.vlgmr.msra.gmra.mrb[2].mxu0 %vm714_vm3, %v901_v47 }
 0x44f   : > { %v3087_v52 = vpop.eup %3086  ;;  %2868 = vmatpush3.xpose.msk.msra.mxu0 %vm714_vm3, %v1052_v48  ;;  %2869 = vmatprep.mubr.msk.f32.mxu0 %vm3195_vm2, %v3194_v44 }
 0x450   : > { %v902_v53 = vmul.f32 %v3087_v52, %v3083_v30  ;;  %2877 = vmatprep.subr.mxu0 %v3194_v44 }
 0x452   : > { %2865 = vmatmul.mubr.msk.f32.vlgmr.msra.gmra.mrb[8].mxu1 %vm714_vm3, %v902_v53  ;;  %2870 = vmatmul.mubr.msk.f32.vlgmr.msra.gmra.mrb[4].mxu0 %vm714_vm3, %v1050_v40 }
 0x453   : > { %2873 = vmatpush3.xpose.msk.msra.mxu1 %vm714_vm3, %v1130_v39  ;;  %2874 = vmatprep.mubr.msk.f32.mxu1 %vm3195_vm2, %v3194_v44 }
 0x454   : > { %2882 = vmatprep.subr.mxu1 %v3194_v44  ;;  %2879 = vmatprep.mubr.msk.f32.mxu0 %vm3195_vm2, %v3194_v44 }
 0x456   : > { %2875 = vmatmul.mubr.msk.f32.vlgmr.msra.gmra.mrb[10].mxu1 %vm714_vm3, %v1128_v54 }
 0x457   : > { %2884 = vmatprep.mubr.msk.f32.mxu1 %vm3195_vm2, %v3194_v44 }
 0x521   : > { %v3430_v56 = vpop.f32.mrb[2].mxu0 }
 0x522   : > { %v2861_v60 = vpop.f32.mrb[3].mxu0 }
 0x525   : > { %v3432_v61 = vpop.f32.mrb[8].mxu1  ;;  %v1123_v62 = vpop.f32.mrb[4].mxu0 }
 0x526   : > { %v1205_v63 = vmul.f32 0.35355338, %v1123_v62  ;;  %v2866_v0 = vpop.f32.mrb[9].mxu1  ;;  %v2871_v1 = vpop.f32.mrb[5].mxu0 }
 0x528   : > { %v1207_v2 = vadd.f32 %v1205_v63, %v3389_v9 }
 0x529   : > { %v1201_v3 = vpop.f32.mrb[10].mxu1 }
 0x52a   : > { %v1206_v4 = vmul.f32 0.35355338, %v1201_v3  ;;  %v2876_v5 = vpop.f32.mrb[11].mxu1  ;;  %v1209_v6 = vsel %vm714_vm3, %v1207_v2, -inf }
 0x52b   : > { %1210 = vmax.xlane.f32.xlu0 %v1209_v6 }
 0x52c   : > { %v1208_v7 = vadd.f32 %v1206_v4, %v3393_v15 }
 0x52e   : > { %v1212_v8 = vsel %vm714_vm3, %v1208_v7, -inf }
 0x52f   : > { %1213 = vmax.xlane.f32.xlu1 %v1212_v8 }
 0x540   : > { %1309 = vrot.lane.b32.xlu1 %v3404_v37, %s3196_s18 }
 0x541   : > { %1232 = vrot.lane.b32.xlu0 %v3406_v38, %s3196_s18 }
 0x544   : > { %1387 = vrot.lane.b32.xlu1 %v3351_v57, %s3198_s22 }
 0x548   : > { %1465 = vrot.lane.b32.xlu1 %v3349_v55, %s3198_s22 }
 0x54c   : > { %1463 = vrot.lane.b32.xlu1 %v3368_v59, %s3198_s22 }
 0x5b8   : > { %v1211_v10 = vpop.xlane.xlu0 %1210 }
 0x5b9   : > { %v1215_v11 = vsub.f32 %v1207_v2, %v1211_v10 }
 0x5bb   : > { %v1217_v12 = vmul.f32 1.442695, %v1215_v11 }
 0x5bc   : > { %v1233_v13 = vpop.permute.xlu0 %1232  ;;  %v1214_v14 = vpop.xlane.xlu1 %1213 }
 0x5bd   : > { %3088 = vpow2.f32 %v1217_v12  ;;  %v1216_v16 = vsub.f32 %v1208_v7, %v1214_v14  ;;  %2878 = vmatpush3.msra.mxu0 %v1233_v13 }
 0x5be   : > { %2887 = vmatprep.subr.mxu0 %v3194_v44 }
 0x5bf   : > { %v1219_v17 = vmul.f32 1.442695, %v1216_v16 }
 0x5c0   : > { %v1310_v18 = vpop.permute.xlu1 %1309 }
 0x5c1   : > { %3090 = vpow2.f32 %v1219_v17  ;;  %2883 = vmatpush3.msra.mxu1 %v1310_v18 }
 0x5c2   : > { %2892 = vmatprep.subr.mxu1 %v3194_v44 }
 0x5c4   : > { %v1388_v25 = vpop.permute.xlu1 %1387 }
 0x5c7   : > { %v3089_v19 = vpop.eup %3088 }
 0x5c8   : > { %v1221_v20 = vsel %vm714_vm3, %v3089_v19, 0.0  ;;  %v1466_v29 = vpop.permute.xlu1 %1465 }
 0x5c9   : > { %1222 = vadd.xlane.f32.xlu0 %v1221_v20 }
 0x5cb   : > { %v3091_v21 = vpop.eup %3090 }
 0x5cc   : > { %v1224_v22 = vsel %vm714_vm3, %v3091_v21, 0.0  ;;  %v1464_v32 = vpop.permute.xlu1 %1463 }
 0x5cd   : > { %1225 = vadd.xlane.f32.xlu0 %v1224_v22 }
 0x5e3   : > { %1385 = vrot.lane.b32.xlu0 %v3357_v58, %s3198_s22 }
 0x656   : > { %v1223_v23 = vpop.xlane.xlu0 %1222 }
 0x657   : > { %3092 = vrcp.f32 %v1223_v23 }
 0x65a   : > { %v1226_v24 = vpop.xlane.xlu0 %1225 }
 0x65b   : > { %3094 = vrcp.f32 %v1226_v24 }
 0x65e   : > { %v1386_v31 = vpop.permute.xlu0 %1385 }
 0x661   : > { %v3093_v26 = vpop.eup %3092 }
 0x662   : > { %v1229_v27 = vmul.f32 %v3093_v26, %v3089_v19 }
 0x664   : > { %2880 = vmatmul.mubr.msk.f32.vlgmr.msra.gmra.mrb[6].mxu0 %vm714_vm3, %v1229_v27 }
 0x665   : > { %v3095_v28 = vpop.eup %3094  ;;  %2888 = vmatpush3.xpose.msk.msra.mxu0 %vm714_vm3, %v1388_v25  ;;  %2889 = vmatprep.mubr.msk.f32.mxu0 %vm3195_vm2, %v3194_v44 }
 0x666   : > { %v1230_v30 = vmul.f32 %v3095_v28, %v3091_v21  ;;  %2897 = vmatprep.subr.mxu0 %v3194_v44 }
 0x668   : > { %2885 = vmatmul.mubr.msk.f32.vlgmr.msra.gmra.mrb[12].mxu1 %vm714_vm3, %v1230_v30  ;;  %2890 = vmatmul.mubr.msk.f32.vlgmr.msra.gmra.mrb[8].mxu0 %vm714_vm3, %v1386_v31 }
 0x669   : > { %2893 = vmatpush3.xpose.msk.msra.mxu1 %vm714_vm3, %v1466_v29  ;;  %2894 = vmatprep.mubr.msk.f32.mxu1 %vm3195_vm2, %v3194_v44 }
 0x66a   : > { %2902 = vmatprep.subr.mxu1 %v3194_v44  ;;  %2899 = vmatprep.mubr.msk.f32.mxu0 %vm3195_vm2, %v3194_v44 }
 0x66c   : > { %2895 = vmatmul.mubr.msk.f32.vlgmr.msra.gmra.mrb[14].mxu1 %vm714_vm3, %v1464_v32 }
 0x66d   : > { %2904 = vmatprep.mubr.msk.f32.mxu1 %vm3195_vm2, %v3194_v44 }
 0x737   : > { %v3470_v33 = vpop.f32.mrb[6].mxu0 }
 0x738   : > { %v2881_v34 = vpop.f32.mrb[7].mxu0 }
 0x73b   : > { %v3472_v36 = vpop.f32.mrb[12].mxu1  ;;  %v1459_v39 = vpop.f32.mrb[8].mxu0 }
 0x73c   : > { %v1541_v40 = vmul.f32 0.35355338, %v1459_v39  ;;  %v2886_v41 = vpop.f32.mrb[13].mxu1  ;;  %v2891_v43 = vpop.f32.mrb[9].mxu0 }
 0x73e   : > { %v1543_v45 = vadd.f32 %v1541_v40, %v3389_v9 }
 0x73f   : > { %v1537_v47 = vpop.f32.mrb[14].mxu1 }
 0x740   : > { %v1542_v48 = vmul.f32 0.35355338, %v1537_v47  ;;  %v2896_v52 = vpop.f32.mrb[15].mxu1  ;;  %v1545_v53 = vsel %vm714_vm3, %v1543_v45, -inf }
 0x741   : > { %1546 = vmax.xlane.f32.xlu0 %v1545_v53 }
 0x742   : > { %v1544_v54 = vadd.f32 %v1542_v48, %v3393_v15 }
 0x744   : > { %v1548_v60 = vsel %vm714_vm3, %v1544_v54, -inf }
 0x745   : > { %1549 = vmax.xlane.f32.xlu1 %v1548_v60  ;;  %v2714_v60 = vld [vmem:[%s3274_s16 + $0x60] sm:$0xff] }
 0x756   : > { %1643 = vrot.lane.b32.xlu1 %v3404_v37, %s3198_s22 }
 0x757   : > { %1567 = vrot.lane.b32.xlu0 %v3406_v38, %s3198_s22 }
 0x75a   : > { %1721 = vrot.lane.b32.xlu1 %v3351_v57, %s3199_s23 }
 0x75e   : > { %1799 = vrot.lane.b32.xlu1 %v3349_v55, %s3199_s23 }
 0x762   : > { %1797 = vrot.lane.b32.xlu1 %v3368_v59, %s3199_s23 }
 0x7ce   : > { %v1547_v62 = vpop.xlane.xlu0 %1546 }
 0x7cf   : > { %v1551_v63 = vsub.f32 %v1543_v45, %v1547_v62  ;;  %v2715_v62 = vld [vmem:[%s3274_s16 + $0x68] sm:$0xff] }
 0x7d1   : > { %v1553_v0 = vmul.f32 1.442695, %v1551_v63  ;;  %v2716_v63 = vld [vmem:[%s3274_s16 + $0x70] sm:$0xff] }
 0x7d2   : > { %v1568_v1 = vpop.permute.xlu0 %1567  ;;  %v1550_v2 = vpop.xlane.xlu1 %1549 }
 0x7d3   : > { %3096 = vpow2.f32 %v1553_v0  ;;  %v1552_v3 = vsub.f32 %v1544_v54, %v1550_v2  ;;  %2898 = vmatpush3.msra.mxu0 %v1568_v1  ;;  %v2717_v0 = vld [vmem:[%s3274_s16 + $0x78] sm:$0xff] }
 0x7d4   : > { %2907 = vmatprep.subr.mxu0 %v3194_v44  ;;  %v3007_v1 = vpack.c.bf16 %v2717_v0, %v2716_v63 }
 0x7d5   : > { %v1555_v4 = vmul.f32 1.442695, %v1552_v3 }
 0x7d6   : > { %v1644_v5 = vpop.permute.xlu1 %1643 }
 0x7d7   : > { %3098 = vpow2.f32 %v1555_v4  ;;  %2903 = vmatpush3.msra.mxu1 %v1644_v5 }
 0x7d8   : > { %2912 = vmatprep.subr.mxu1 %v3194_v44 }
 0x7da   : > { %v1722_v10 = vpop.permute.xlu1 %1721 }
 0x7dd   : > { %v3097_v55 = vpop.eup %3096 }
 0x7de   : > { %v1557_v57 = vsel %vm714_vm3, %v3097_v55, 0.0  ;;  %v1800_v14 = vpop.permute.xlu1 %1799 }
 0x7df   : > { %1558 = vadd.xlane.f32.xlu0 %v1557_v57 }
 0x7e1   : > { %v3099_v59 = vpop.eup %3098 }
 0x7e2   : > { %v1560_v6 = vsel %vm714_vm3, %v3099_v59, 0.0  ;;  %v1798_v17 = vpop.permute.xlu1 %1797 }
 0x7e3   : > { %1561 = vadd.xlane.f32.xlu0 %v1560_v6 }
 0x7f9   : > { %1719 = vrot.lane.b32.xlu0 %v3357_v58, %s3199_s23 }
 0x86c   : > { %v1559_v7 = vpop.xlane.xlu0 %1558 }
 0x86d   : > { %3100 = vrcp.f32 %v1559_v7 }
 0x870   : > { %v1562_v8 = vpop.xlane.xlu0 %1561 }
 0x871   : > { %3102 = vrcp.f32 %v1562_v8 }
 0x874   : > { %v1720_v58 = vpop.permute.xlu0 %1719 }
 0x877   : > { %v3101_v11 = vpop.eup %3100 }
 0x878   : > { %v1565_v12 = vmul.f32 %v3101_v11, %v3097_v55 }
 0x87a   : > { %2900 = vmatmul.mubr.msk.f32.vlgmr.msra.gmra.mrb[10].mxu0 %vm714_vm3, %v1565_v12 }
 0x87b   : > { %v3103_v13 = vpop.eup %3102  ;;  %2908 = vmatpush3.xpose.msk.msra.mxu0 %vm714_vm3, %v1722_v10  ;;  %2909 = vmatprep.mubr.msk.f32.mxu0 %vm3195_vm2, %v3194_v44 }
 0x87c   : > { %v1566_v16 = vmul.f32 %v3103_v13, %v3099_v59  ;;  %2917 = vmatprep.subr.mxu0 %v3194_v44 }
 0x87e   : > { %2905 = vmatmul.mubr.msk.f32.vlgmr.msra.gmra.mrb[16].mxu1 %vm714_vm3, %v1566_v16  ;;  %2910 = vmatmul.mubr.msk.f32.vlgmr.msra.gmra.mrb[12].mxu0 %vm714_vm3, %v1720_v58  ;;  %v2092_v58 = vsub.s32 3, %v3335_v46 }
 0x87f   : > { %2913 = vmatpush3.xpose.msk.msra.mxu1 %vm714_vm3, %v1800_v14  ;;  %2914 = vmatprep.mubr.msk.f32.mxu1 %vm3195_vm2, %v3194_v44 }
 0x880   : > { %2922 = vmatprep.subr.mxu1 %v3194_v44  ;;  %2919 = vmatprep.mubr.msk.f32.mxu0 %vm3195_vm2, %v3194_v44 }
 0x882   : > { %2915 = vmatmul.mubr.msk.f32.vlgmr.msra.gmra.mrb[18].mxu1 %vm714_vm3, %v1798_v17  ;;  %v2093_v17 = vrot.slane %v3339_v50, %v2092_v58 }
 0x883   : > { %2924 = vmatprep.mubr.msk.f32.mxu1 %vm3195_vm2, %v3194_v44 }
 0x94d   : > { %v1639_v18 = vpop.f32.mrb[10].mxu0 }
 0x94e   : > { %v2901_v19 = vpop.f32.mrb[11].mxu0 }
 0x951   : > { %v1715_v20 = vpop.f32.mrb[16].mxu1  ;;  %v1793_v21 = vpop.f32.mrb[12].mxu0 }
 0x952   : > { %v1875_v22 = vmul.f32 0.35355338, %v1793_v21  ;;  %v2906_v23 = vpop.f32.mrb[17].mxu1  ;;  %v2911_v24 = vpop.f32.mrb[13].mxu0 }
 0x954   : > { %v1877_v25 = vadd.f32 %v1875_v22, %v3389_v9 }
 0x955   : > { %v1871_v26 = vpop.f32.mrb[18].mxu1 }
 0x956   : > { %v1876_v27 = vmul.f32 0.35355338, %v1871_v26  ;;  %v2916_v28 = vpop.f32.mrb[19].mxu1  ;;  %v1879_v29 = vsel %vm714_vm3, %v1877_v25, -inf }
 0x957   : > { %1880 = vmax.xlane.f32.xlu0 %v1879_v29 }
 0x958   : > { %v1878_v30 = vadd.f32 %v1876_v27, %v3393_v15 }
 0x95a   : > { %v1882_v31 = vsel %vm714_vm3, %v1878_v30, -inf }
 0x95b   : > { %1883 = vmax.xlane.f32.xlu1 %v1882_v31 }
 0x96c   : > { %1977 = vrot.lane.b32.xlu1 %v3404_v37, %s3199_s23 }
 0x970   : > { %2055 = vrot.lane.b32.xlu1 %v3470_v33, %s3200_s25 }
 0x974   : > { %2057 = vrot.lane.b32.xlu1 %v3472_v36, %s3200_s25 }
 0x978   : > { %2065 = vrot.lane.b32.xlu1 %v1715_v20, %s3201_s26 }
 0x9e4   : > { %v1881_v44 = vpop.xlane.xlu0 %1880 }
 0x9e5   : > { %v1885_v9 = vsub.f32 %v1877_v25, %v1881_v44  ;;  %v2216_v44 = vld [vmem:[%s3279_s19] sm:$0xff] }
 0x9e7   : > { %v1887_v32 = vmul.f32 1.442695, %v1885_v9  ;;  %v2217_v9 = vld [vmem:[%s3279_s19 + $0x8] sm:$0xff] }
 0x9e8   : > { %v1884_v34 = vpop.xlane.xlu1 %1883 }
 0x9e9   : > { %3104 = vpow2.f32 %v1887_v32  ;;  %v1886_v15 = vsub.f32 %v1878_v30, %v1884_v34  ;;  %v3011_v32 = vpack.c.bf16 %v2217_v9, %v2216_v44  ;;  %v2218_v34 = vld [vmem:[%s3279_s19 + $0x10] sm:$0xff]  ;;  %v2333_v44 = vsub.s32 7, %v3335_v46 }
 0x9eb   : > { %v1889_v39 = vmul.f32 1.442695, %v1886_v15  ;;  %v2219_v15 = vld [vmem:[%s3279_s19 + $0x18] sm:$0xff]  ;;  %v2334_v9 = vrot.slane %v3339_v50, %v2333_v44 }
 0x9ec   : > { %v1978_v40 = vpop.permute.xlu1 %1977 }
 0x9ed   : > { %3106 = vpow2.f32 %v1889_v39  ;;  %2923 = vmatpush3.msra.mxu1 %v1978_v40  ;;  %v3015_v39 = vpack.c.bf16 %v2219_v15, %v2218_v34 }
 0x9ee   : > { %3012 = vmatprep.subr.bf16.mxu1 %v3011_v32 }
 0x9f0   : > { %v2056_v55 = vpop.permute.xlu1 %2055 }
 0x9f1   : > { %v2077_v6 = vsel %vm714_vm3, %v3430_v56, %v2056_v55  ;;  %v2326_v55 = vld [vmem:[%s3284_s24 + $0x18] sm:$0xff] }
 0x9f3   : > { %v3105_v37 = vpop.eup %3104 }
 0x9f4   : > { %v1891_v41 = vsel %vm714_vm3, %v3105_v37, 0.0  ;;  %v2058_v57 = vpop.permute.xlu1 %2057 }
 0x9f5   : > { %1892 = vadd.xlane.f32.xlu0 %v1891_v41  ;;  %v2078_v12 = vsel %vm714_vm3, %v3432_v61, %v2058_v57 }
 0x9f7   : > { %v3107_v33 = vpop.eup %3106 }
 0x9f8   : > { %v1894_v43 = vsel %vm714_vm3, %v3107_v33, 0.0  ;;  %v2066_v7 = vpop.permute.xlu1 %2065 }
 0x9f9   : > { %1895 = vadd.xlane.f32.xlu0 %v1894_v43  ;;  %v2081_v13 = vsel %vm2079_vm5, %v2078_v12, %v2066_v7  ;;  %v2222_v12 = vsub.s32 6, %v3335_v46 }
 0xa0f   : > { %1901 = vrot.lane.b32.xlu0 %v3406_v38, %s3199_s23  ;;  %v3003_v38 = vpack.c.bf16 %v2715_v62, %v2714_v60 }
 0xa13   : > { %2063 = vrot.lane.b32.xlu0 %v1639_v18, %s3201_s26 }
 0xa82   : > { %v1893_v36 = vpop.xlane.xlu0 %1892 }
 0xa83   : > { %3108 = vrcp.f32 %v1893_v36 }
 0xa86   : > { %v1896_v45 = vpop.xlane.xlu0 %1895 }
 0xa87   : > { %3110 = vrcp.f32 %v1896_v45  ;;  %v2206_v45 = vsub.s32 4, %v3335_v46 }
 0xa8a   : > { %v1902_v47 = vpop.permute.xlu0 %1901 }
 0xa8b   : > { %2918 = vmatpush3.msra.mxu0 %v1902_v47  ;;  %v2212_v47 = vsub.s32 5, %v3335_v46  ;;  %v2465_v46 = vld [vmem:[%s3651_s7] sm:$0xff] (!%p2724_p5) }
 0xa8c   : > { %3004 = vmatprep.subr.bf16.mxu0 %v3003_v38 }
 0xa8d   : > { %v3109_v48 = vpop.eup %3108 }
 0xa8e   : > { %v1899_v52 = vmul.f32 %v3109_v48, %v3105_v37  ;;  %v2064_v59 = vpop.permute.xlu0 %2063  ;;  %v2207_v48 = vrot.slane %v3339_v50, %v2206_v45 }
 0xa8f   : > { %v2080_v8 = vsel %vm2079_vm5, %v2077_v6, %v2064_v59  ;;  %v2327_v59 = vld [vmem:[%s3284_s24 + $0x20] sm:$0xff]  ;;  %v2328_v6 = vld [vmem:[%s3284_s24 + $0x28] sm:$0xff] }
 0xa90   : > { %2920 = vmatmul.mubr.msk.f32.vlgmr.msra.gmra.mrb[14].mxu0 %vm714_vm3, %v1899_v52  ;;  %v3027_v7 = vpack.c.bf16 %v2328_v6, %v2327_v59 }
 0xa91   : > { %v3111_v53 = vpop.eup %3110  ;;  %3006 = vmatpush3.bf16.msra.mxu0 %v3003_v38 }
 0xa92   : > { %v1900_v54 = vmul.f32 %v3111_v53, %v3107_v33  ;;  %3008 = vmatprep.subr.bf16.mxu0 %v3007_v1 }
 0xa94   : > { %2925 = vmatmul.mubr.msk.f32.vlgmr.msra.gmra.mrb[20].mxu1 %vm714_vm3, %v1900_v54  ;;  %v2213_v54 = vrot.slane %v3339_v50, %v2212_v47 }
 0xa95   : > { %3010 = vmatpush3.bf16.msra.mxu0 %v3007_v1  ;;  %3014 = vmatpush3.bf16.msra.mxu1 %v3011_v32 }
 0xa96   : > { %3016 = vmatprep.subr.bf16.mxu1 %v3015_v39 }
 0xa99   : > { %3018 = vmatpush3.bf16.msra.mxu1 %v3015_v39 }
 0xb63   : > { %v1973_v2 = vpop.f32.mrb[14].mxu0 }
 0xb64   : > { %2071 = vrot.lane.b32.xlu0 %v1973_v2, %s3202_s28  ;;  %v2921_v3 = vpop.f32.mrb[15].mxu0  ;;  %v2323_v2 = vld [vmem:[%s3284_s24] sm:$0xff] }
 0xb65   : > { %v2324_v3 = vld [vmem:[%s3284_s24 + $0x8] sm:$0xff] }
 0xb67   : > { %v2049_v4 = vpop.f32.mrb[20].mxu1 }
 0xb68   : > { %2073 = vrot.lane.b32.xlu1 %v2049_v4, %s3202_s28  ;;  %v2926_v5 = vpop.f32.mrb[21].mxu1  ;;  %v3019_v4 = vpack.c.bf16 %v2324_v3, %v2323_v2  ;;  %v455_v3 = vld [vmem:[%s3289_s27 + $0x8] sm:$0x3] }
 0xb69   : > { %v2325_v5 = vld [vmem:[%s3284_s24 + $0x10] sm:$0xff] }
 0xb6a   : > { %v3023_v57 = vpack.c.bf16 %v2326_v55, %v2325_v5  ;;  %3020 = vmatprep.subr.bf16.mxu0 %v3019_v4 }
 0xbd6   : > { %v2072_v10 = vpop.permute.xlu0 %2071 }
 0xbd7   : > { %v2083_v11 = vsel %vm2082_vm4, %v2080_v8, %v2072_v10  ;;  %v2329_v8 = vld [vmem:[%s3284_s24 + $0x30] sm:$0xff]  ;;  %v2330_v10 = vld [vmem:[%s3284_s24 + $0x38] sm:$0xff] }
 0xbd8   : > { %2935 = vmatprep.mubr.msk.f32.mxu0 %vm464_vm1, %v2083_v11  ;;  %v3031_v11 = vpack.c.bf16 %v2330_v10, %v2329_v8 }
 0xbda   : > { %v2074_v14 = vpop.permute.xlu1 %2073 }
 0xbdb   : > { %v2084_v16 = vsel %vm2082_vm4, %v2081_v13, %v2074_v14  ;;  %v2223_v13 = vrot.slane %v3339_v50, %v2222_v12  ;;  %v3203_v12 = vmov (!%p2724_p5), 0.0|0.0  }
 0xbdc   : > { %2936 = vmatmul.mubr.msk.f32.vlgmr.msra.gmra.mrb[16].mxu0 %vm464_vm1, %v2084_v16 }
 0xbdd   : > { %3022 = vmatpush3.bf16.msra.mxu0 %v3019_v4  ;;  %v2448_v4 = vrot.slane %v455_v3, %v3342_v51  ;;  %v2467_v51 = vld [vmem:[%s3651_s7 + $0x10] sm:$0xff] (!%p2724_p5) }
 0xbde   : > { %3024 = vmatprep.subr.bf16.mxu0 %v3023_v57 }
 0xbe1   : > { %3026 = vmatpush3.bf16.msra.mxu0 %v3023_v57  ;;  %v2454_v57 = vrot.slane %v455_v3, %v553_v49  ;;  %v2466_v49 = vld [vmem:[%s3651_s7 + $0x8] sm:$0xff] (!%p2724_p5) }
 0xbe2   : > { %3028 = vmatprep.subr.bf16.mxu0 %v3027_v7 }
 0xbe5   : > { %3030 = vmatpush3.bf16.msra.mxu0 %v3027_v7 }
 0xbe6   : > { %3032 = vmatprep.subr.bf16.mxu0 %v3031_v11 }
 0xbe9   : > { %3034 = vmatpush3.bf16.msra.mxu0 %v3031_v11 }
 0xbea   : > { %3035 = vmatprep.subr.bf16.mxu0 (!%p2724_p5), %v3203_v12 }
 0xcaf   : > { %v2937_v56 = vpop.f32.mrb[16].mxu0 }
 0xcb0   : > { %v2172_v18 = vadd.f32 %v2937_v56, %v2093_v17  ;;  %v2166_v19 = vpop.f32.mrb[17].mxu0 }
 0xcb1   : > { %v2167_v20 = vadd.f32 %v2166_v19, %v2093_v17 }
 0xcb2   : > { %v2176_v21 = vadd.f32 %v2172_v18, %v3324_v42 }
 0xcb3   : > { %v2175_v22 = vadd.f32 %v2167_v20, %v3314_v35 }
 0xcb4   : > { %v2180_v23 = vsel %vm464_vm1, %v2176_v21, 0.0 }
 0xcb5   : > { %2181 = vadd.xlane.f32.xlu1 %v2180_v23  ;;  %v2177_v61 = vsel %vm464_vm1, %v2175_v22, 0.0 }
 0xcb6   : > { %2178 = vadd.xlane.f32.xlu0 %v2177_v61 }
 0xd42   : > { %v2182_v24 = vpop.xlane.xlu1 %2181 }
 0xd43   : > { %v2185_v25 = vmul.f32 0.03125, %v2182_v24  ;;  %v2179_v26 = vpop.xlane.xlu0 %2178 }
 0xd44   : > { %v2184_v27 = vmul.f32 0.03125, %v2179_v26 }
 0xd45   : > { %v2187_v28 = vsub.f32 %v2176_v21, %v2185_v25 }
 0xd46   : > { %v2186_v29 = vsub.f32 %v2175_v22, %v2184_v27 }
 0xd47   : > { %v2189_v35 = vmul.f32 %v2187_v28, %v2187_v28 }
 0xd48   : > { %v2188_v30 = vmul.f32 %v2186_v29, %v2186_v29 }
 0xd49   : > { %v2193_v31 = vsel %vm464_vm1, %v2189_v35, 0.0 }
 0xd4a   : > { %v2190_v42 = vsel %vm464_vm1, %v2188_v30, 0.0 }
 0xd4b   : > { %2191 = vadd.xlane.f32.xlu0 %v2190_v42 }
 0xd4f   : > { %2194 = vadd.xlane.f32.xlu0 %v2193_v31 }
 0xdd8   : > { %v2192_v40 = vpop.xlane.xlu0 %2191 }
 0xdd9   : > { %v2196_v37 = vmul.f32 0.03125, %v2192_v40 }
 0xddb   : > { %v2198_v41 = vadd.f32 1e-12, %v2196_v37 }
 0xddc   : > { %v2195_v33 = vpop.xlane.xlu0 %2194 }
 0xddd   : > { %3112 = vrsqrt.f32 %v2198_v41  ;;  %v2197_v43 = vmul.f32 0.03125, %v2195_v33 }
 0xddf   : > { %v2199_v36 = vadd.f32 1e-12, %v2197_v43 }
 0xde1   : > { %3114 = vrsqrt.f32 %v2199_v36 }
 0xde7   : > { %v3113_v52 = vpop.eup %3112 }
 0xde8   : > { %v2202_v53 = vmul.f32 %v3113_v52, %v2186_v29 }
 0xdea   : > { %v2208_v60 = vmul.f32 %v2207_v48, %v2202_v53 }
 0xdeb   : > { %v3115_v62 = vpop.eup %3114 }
 0xdec   : > { %v2203_v38 = vmul.f32 %v3115_v62, %v2187_v28  ;;  %v2214_v63 = vadd.f32 %v2213_v54, %v2208_v60 }
 0xdee   : > { %v2209_v0 = vmul.f32 %v2207_v48, %v2203_v38  ;;  %2946 = vmatprep.mubr.msk.f32.mxu1 %vm464_vm1, %v2214_v63 }
 0xdf0   : > { %v2215_v1 = vadd.f32 %v2213_v54, %v2209_v0 }
 0xdf2   : > { %2947 = vmatmul.mubr.msk.f32.vlgmr.msra.gmra.mrb[22].mxu1 %vm464_vm1, %v2215_v1 }
 0xec5   : > { %v2948_v14 = vpop.f32.mrb[22].mxu1 }
 0xec6   : > { %v2302_v16 = vadd.f32 %v2948_v14, %v2223_v13  ;;  %v2296_v58 = vpop.f32.mrb[23].mxu1  ;;  %v2468_v14 = vld [vmem:[%s3651_s7 + $0x18] sm:$0xff] (!%p2724_p5) }
 0xec7   : > { %v2297_v17 = vadd.f32 %v2296_v58, %v2223_v13  ;;  %v3036_v13 = vpack.c.bf16 (!%p2724_p5), %v2466_v49, %v2465_v46  ;;  %v3039_v58 = vpack.c.bf16 (!%p2724_p5), %v2468_v14, %v2467_v51 }
 0xec8   : > { %v2308_v56 = vmul.f32 0.044715, %v2302_v16  ;;  %v2306_v42 = vmul.f32 0.5, %v2302_v16 }
 0xec9   : > { %v2307_v18 = vmul.f32 0.044715, %v2297_v17  ;;  %v2305_v29 = vmul.f32 0.5, %v2297_v17 }
 0xeca   : > { %v2310_v19 = vmul.f32 %v2308_v56, %v2302_v16 }
 0xecb   : > { %v2309_v20 = vmul.f32 %v2307_v18, %v2297_v17  ;;  %v2725_v18 = vld [vmem:[%s3646_s2 + $0x2] ss:$0 sm:$0xff] (!%p2724_p5) }
 0xecc   : > { %v2312_v21 = vmul.f32 %v2310_v19, %v2302_v16 }
 0xecd   : > { %v2311_v22 = vmul.f32 %v2309_v20, %v2297_v17 }
 0xece   : > { %v2314_v23 = vadd.f32 %v2312_v21, %v2302_v16  ;;  %v3205_v16 = vmov (!%p2724_p5), 0.0  }
 0xecf   : > { %v2313_v61 = vadd.f32 %v2311_v22, %v2297_v17 }
 0xed0   : > { %v2316_v24 = vmul.f32 0.7978846, %v2314_v23 }
 0xed1   : > { %v2315_v25 = vmul.f32 0.7978846, %v2313_v61 }
 0xed2   : > { %3116 = vtanh.f32 %v2316_v24 }
 0xed3   : > { %3118 = vtanh.f32 %v2315_v25 }
 0xedc   : > { %v3117_v26 = vpop.eup %3116 }
 0xedd   : > { %v3119_v27 = vpop.eup %3118  ;;  %v2320_v28 = vadd.f32 1.0, %v3117_v26 }
 0xede   : > { %v2319_v30 = vadd.f32 1.0, %v3119_v27 }
 0xedf   : > { %v2322_v31 = vmul.f32 %v2320_v28, %v2306_v42 }
 0xee0   : > { %v2321_v35 = vmul.f32 %v2319_v30, %v2305_v29 }
 0xee2   : > { %2965 = vmatprep.mubr.msk.f32.mxu0 %vm2335_vm6, %v2321_v35 }
 0xee3   : > { %2966 = vmatmul.mubr.msk.f32.vlgmr.msra.gmra.mrb[18].mxu0 %vm2335_vm6, %v2322_v31 }
 0xee4   : > { %2976 = vmatprep.mubr.msk.f32.mxu0 (!%p2724_p5), %vm3204_vm7, %v3205_v16  ;;  %3037 = vmatpush3.bf16.msra.mxu0 (!%p2724_p5), %v3036_v13 }
 0xee5   : > { %3038 = vmatprep.subr.bf16.mxu0 (!%p2724_p5), %v3203_v12 }
 0xee8   : > { %3040 = vmatpush3.bf16.msra.mxu0 (!%p2724_p5), %v3039_v58 }
 0xfb6   : > { %v2967_v32 = vpop.f32.mrb[18].mxu0 }
 0xfb7   : > { %v2414_v34 = vadd.f32 %v2967_v32, %v2334_v9  ;;  %v2408_v15 = vpop.f32.mrb[19].mxu0 }
 0xfb8   : > { %v2409_v39 = vadd.f32 %v2408_v15, %v2334_v9 }
 0xfb9   : > { %v2418_v40 = vadd.f32 %v2414_v34, %v2215_v1 }
 0xfba   : > { %v2417_v37 = vadd.f32 %v2409_v39, %v2214_v63 }
 0xfbb   : > { %v2422_v41 = vsel %vm464_vm1, %v2418_v40, 0.0 }
 0xfbc   : > { %2423 = vadd.xlane.f32.xlu1 %v2422_v41  ;;  %v2419_v33 = vsel %vm464_vm1, %v2417_v37, 0.0 }
 0xfbd   : > { %2420 = vadd.xlane.f32.xlu0 %v2419_v33 }
0x1049   : > { %v2424_v43 = vpop.xlane.xlu1 %2423 }
0x104a   : > { %v2426_v36 = vmul.f32 0.03125, %v2424_v43  ;;  %v2421_v45 = vpop.xlane.xlu0 %2420 }
0x104b   : > { %v2425_v47 = vmul.f32 0.03125, %v2421_v45 }
0x104c   : > { %v2428_v48 = vsub.f32 %v2418_v40, %v2426_v36 }
0x104d   : > { %v2427_v52 = vsub.f32 %v2417_v37, %v2425_v47 }
0x104e   : > { %v2430_v50 = vmul.f32 %v2428_v48, %v2428_v48 }
0x104f   : > { %v2429_v53 = vmul.f32 %v2427_v52, %v2427_v52 }
0x1050   : > { %v2434_v54 = vsel %vm464_vm1, %v2430_v50, 0.0 }
0x1051   : > { %2435 = vadd.xlane.f32.xlu1 %v2434_v54  ;;  %v2431_v60 = vsel %vm464_vm1, %v2429_v53, 0.0 }
0x1052   : > { %2432 = vadd.xlane.f32.xlu0 %v2431_v60 }
0x10de   : > { %v2436_v62 = vpop.xlane.xlu1 %2435 }
0x10df   : > { %v2438_v38 = vmul.f32 0.03125, %v2436_v62  ;;  %v2433_v63 = vpop.xlane.xlu0 %2432 }
0x10e0   : > { %v2437_v0 = vmul.f32 0.03125, %v2433_v63 }
0x10e1   : > { %v2440_v1 = vadd.f32 1e-12, %v2438_v38 }
0x10e2   : > { %v2439_v2 = vadd.f32 1e-12, %v2437_v0 }
0x10e3   : > { %3120 = vrsqrt.f32 %v2440_v1 }
0x10e4   : > { %3122 = vrsqrt.f32 %v2439_v2 }
0x10ed   : > { %v3121_v5 = vpop.eup %3120 }
0x10ee   : > { %v3123_v55 = vpop.eup %3122  ;;  %v2444_v59 = vmul.f32 %v3121_v5, %v2428_v48 }
0x10ef   : > { %v2443_v6 = vmul.f32 %v3123_v55, %v2427_v52  ;;  %2462 = sbr.rel (%p2724_p5) target bundleno = 4569 (0x11d9), region = 60 }
0x10f0   : > { %v2450_v7 = vmul.f32 %v2448_v4, %v2444_v59 }
0x10f1   : > { %v2449_v8 = vmul.f32 %v2448_v4, %v2443_v6 }
0x10f2   : > { %v2456_v10 = vadd.f32 %v2454_v57, %v2450_v7 }
0x10f3   : > { %v2455_v11 = vadd.f32 %v2454_v57, %v2449_v8 }
0x10f4   : > { %2458 = vst.msk [vmem:[#allocation2 + $0x8] sm:$0xff] %vm464_vm1, %v2456_v10  ;;  %2464 = vst.msk [vmem:[#allocation3 + $0x8] sm:$0xff] (!%p2724_p5), %vm464_vm1, %v2456_v10  ;;  %v2476_v17 = vrot.slane (!%p2724_p5), %v2456_v10, 7 }
0x10f5   : > { %2457 = vst.msk [vmem:[#allocation2] sm:$0xff] %vm464_vm1, %v2455_v11  ;;  %2463 = vst.msk [vmem:[#allocation3] sm:$0xff] (!%p2724_p5), %vm464_vm1, %v2455_v11 }
0x10f6   : > { %v2478_v56 = vsel %vm2477_vm8, %v2476_v17, %v2455_v11 }
0x10f7   : > { %2977 = vmatmul.mubr.msk.f32.vlgmr.msra.gmra.mrb[0].mxu0 %vm464_vm1, %v2478_v56 }
0x11ca   : > { %v2547_v19 = vpop.f32.mrb[0].mxu0 }
0x11cb   : > { %v2548_v20 = vadd.f32 %v2725_v18, %v2547_v19  ;;  %v2978_v21 = vpop.f32.mrb[1].mxu0 }
0x11cd   : > { %3124 = vtanh.f32 %v2548_v20 }
0x11d7   : > { %v3125_v22 = vpop.eup %3124 }
0x11d8   : > { %2553 = vst.msk [vmem:[#allocation5] sm:$0x3] %vm2552_vm9, %v3125_v22 }
0x11d9 PF: > { %p3049_p6 = scmp.eq.s32.totalorder %s3265_s10, 1  ;;  %s3206_s17 = smov [#allocation3]  }
0x11da   : > { %s2560_s18 = sshll.u32 %s3206_s17, 4  ;;  %s2561_s18 = int_to_ptr.vmem [resolvable:$true] %s2560_s18 }
0x11db   : > { %s3126_s20 = scalar_lea.vmem %s2561_s18, 256  ;;  %p3133_p10 = scmp.lt.s32.totalorder %s2561_s18, %s2561_s18 }
0x11dc   : > { %p3127_p7 = scmp.ne.s32.totalorder %s2561_s18, %s3126_s20  ;;  %p3134_p11 = scmp.lt.s32.totalorder %s3126_s20, %s3126_s20 }
0x11de   : > { %p3128_p8 = pnand %p3127_p7, %p3049_p6  ;;  %p3135_p12 = por %p3134_p11, %p3133_p10 }
0x11e0   : > { %p3129_p9 = pneg %p3128_p8 }
0x11e2   : > { %p3136_p13 = pnand %p3135_p12, %p3129_p9 }
0x11e4   : > { %3139 = shalt.err (!%p3136_p13)
}
0x11e5   : > { %s3140_s23 = scalar_lea.hbm %s3652_s8, 256 }
0x11e6   : > { %p3141_p0 = scmp.ne.s32.totalorder %s3652_s8, %s3140_s23  ;;  %p3146_p3 = scmp.lt.u32.totalorder %s3140_s23, %s3652_s8 }
0x11e8   : > { %p3142_p1 = pnand %p3141_p0, %p3049_p6 }
0x11ea   : > { %p3143_p2 = pneg %p3142_p1 }
0x11ec   : > { %p3148_p4 = pnand %p3146_p3, %p3143_p2 }
0x11ee   : > { %3151 = shalt.err (!%p3148_p4)
}
0x11ef   : > { %s3207_s24 = smov 128   ;;  %s3208_s12 = smov [#allocation5]  }
0x11f0   : > { %3042 = dma.vmem_to_hbm [thread:$0]  (%p3049_p6), %s2561_s18, 256, %s3652_s8, [#allocation4], %s3207_s24, %s3207_s24, %s3200_s25  }
0x11f1   : > { %s2574_s11 = sshll.u32 %s3208_s12, 4  ;;  %s2575_s11 = int_to_ptr.vmem [resolvable:$true] %s2574_s11 }
0x11f2   : > { %s3152_s13 = scalar_lea.vmem %s2575_s11, 32  ;;  %p3159_p9 = scmp.lt.s32.totalorder %s2575_s11, %s2575_s11 }
0x11f3   : > { %p3153_p5 = scmp.ne.s32.totalorder %s2575_s11, %s3152_s13  ;;  %p3160_p10 = scmp.lt.s32.totalorder %s3152_s13, %s3152_s13 }
0x11f5   : > { %p3154_p7 = pnand %p3153_p5, %p3049_p6  ;;  %p3161_p11 = por %p3160_p10, %p3159_p9 }
0x11f7   : > { %p3155_p8 = pneg %p3154_p7 }
0x11f9   : > { %p3162_p12 = pnand %p3161_p11, %p3155_p8 }
0x11fb   : > { %3165 = shalt.err (!%p3162_p12)
}
0x11fc   : > { %s3166_s17 = scalar_lea.hbm %s3653_s9, 32 }
0x11fd   : > { %p3167_p13 = scmp.ne.s32.totalorder %s3653_s9, %s3166_s17  ;;  %p3172_p2 = scmp.lt.u32.totalorder %s3166_s17, %s3653_s9 }
0x11ff   : > { %p3168_p0 = pnand %p3167_p13, %p3049_p6 }
0x1201   : > { %p3169_p1 = pneg %p3168_p0 }
0x1203   : > { %p3174_p3 = pnand %p3172_p2, %p3169_p1 }
0x1205   : > { %3177 = shalt.err (!%p3174_p3)
}
0x1206   : > { %3044 = dma.vmem_to_hbm [thread:$0]  (%p3049_p6), %s2575_s11, 32, %s3653_s9, [#allocation6]  }
0x1207   : > { %3183 = dma.done.wait (%p3049_p6), [#allocation4], 256  }
0x1208   : > { %3185 = vsyncadd (%p3049_p6), [#allocation4], 4294967040 }
0x1209   : > { %3187 = dma.done.wait (%p3049_p6), [#allocation6], 32  }
0x120a   : > { %3189 = vsyncadd (%p3049_p6), [#allocation6], 4294967264 }
0x120b PF: > { %s22_s30 = sadd.s32 1, %s3192_s30  }
0x120c   : > { %p19_p4 = scmp.ge.s32.totalorder %s22_s30, 4  }
0x120e   :  { %21 = sbr.rel (!%p19_p4) target bundleno = 2 (0x2), region = 107 }
0x1215   :  { %2591 = vsyncpa [#allocation4], 1 }
0x1216   :  { %2593 = vsyncpa [#allocation4 + $0x1], 1 }
0x1217   :  { %2594 = vsyncpa [#allocation6], 1 }

</bundles_post_ra>
